<compile_context>
chip_gen: v7x
topology: tpu7x:2x2x1
jax: 0.10.0
libtpu: 0.0.40
codegen_flags: <defaults>
</compile_context>

<pallas_src>
import math

import jax
import jax.numpy as jnp
from jax import lax
from jax.experimental import pallas as pl
from jax.experimental.pallas import tpu as pltpu  # noqa: F401  (kept for TPU-specific tuning hooks)

# ---------------- config (small synthetic BERT) ----------------
EMB_SIZE = 16
HIDDEN = 32
NUM_LAYERS = 2
NUM_HEADS = 4
HEAD_DIM = HIDDEN // NUM_HEADS
INTERMEDIATE = 64
MAX_POS = 16
LN_EPS = 1e-12
BATCH = 2
SEQ = 8


def _layernorm(h, gamma, beta):
    mu = jnp.mean(h, axis=-1, keepdims=True)
    var = jnp.mean(jnp.square(h - mu), axis=-1, keepdims=True)
    return (h - mu) * lax.rsqrt(var + LN_EPS) * gamma + beta


def _gelu_tanh(x):
    return 0.5 * x * (1.0 + jnp.tanh(0.7978845608028654 * (x + 0.044715 * x * x * x)))


def _dot_t(a, b):
    # a @ b.T without materializing a transpose (contraction on last dim of both).
    return lax.dot_general(a, b, (((1,), (1,)), ((), ())),
                           preferred_element_type=jnp.float32)


# ---------------- fused kernel (whole batch, no grid) ----------------
def reranker_kernel(x_ref, mask_ref,
                    w_emb_ref, b_emb_ref, pos_ref, lne_g_ref, lne_b_ref,
                    wqkv_ref, bqkv_ref, wo_ref, bo_ref, ln1g_ref, ln1b_ref,
                    wi_ref, bi_ref, wff_ref, bff_ref, ln2g_ref, ln2b_ref,
                    wh_ref, bh_ref,
                    o_ref):
    # x_ref:  (B, S, E)        mask_ref: (B, S)   (1 = attend, 0 = ignore)
    # wqkv:   (L, H, 3H) fused [Wq|Wk|Wv];  wo: (L, H, H)
    # o_ref:  (B, S) logits (single lane-dense-ish store at the end)
    B, S, E = x_ref.shape
    H = HIDDEN
    hd = HEAD_DIM

    # ---- embedding: Linear + position embedding + LayerNorm (dropout = identity) ----
    x_flat = x_ref[...].astype(jnp.float32).reshape(B * S, E)            # contiguous fold
    h = jnp.dot(x_flat, w_emb_ref[...], preferred_element_type=jnp.float32)
    pos_tiled = jnp.concatenate([pos_ref[...]] * B, axis=0)              # (B*S, H), hoisted
    h = h + b_emb_ref[...] + pos_tiled
    hcur = _layernorm(h, lne_g_ref[...], lne_b_ref[...])                 # (B*S, H)

    # extended attention mask stacked per (batch, head): (B*NH, 1, S), hoisted once
    ext_rows = (1.0 - mask_ref[...].astype(jnp.float32)) * -10000.0      # (B, S)
    ext_list = []
    for b in range(B):
        ext_list.extend([ext_rows[b:b + 1]] * NUM_HEADS)
    ext = jnp.stack(ext_list, axis=0)                                    # (B*NH, 1, S)

    scale = 1.0 / math.sqrt(hd)

    # ---- BERT encoder layers (unrolled, static NUM_LAYERS) ----
    for l in range(NUM_LAYERS):
        # fused QKV projection: one lane-dense (B*S,H)@(H,3H) matmul, value-SSA
        qkv = jnp.dot(hcur, wqkv_ref[l], preferred_element_type=jnp.float32) + bqkv_ref[l]

        # stack all (batch, head) pairs into one batched attention operand
        q_list, k_list, v_list = [], [], []
        for b in range(B):
            r0 = b * S
            for hh in range(NUM_HEADS):
                c0 = hh * hd
                q_list.append(qkv[r0:r0 + S, c0:c0 + hd])
                k_list.append(qkv[r0:r0 + S, H + c0:H + c0 + hd])
                v_list.append(qkv[r0:r0 + S, 2 * H + c0:2 * H + c0 + hd])
        q_all = jnp.stack(q_list, axis=0)                                # (B*NH, S, hd)
        k_all = jnp.stack(k_list, axis=0)
        v_all = jnp.stack(v_list, axis=0)

        # one batched scores matmul + ONE softmax chain for all heads & batch elems
        s = lax.dot_general(q_all, k_all, (((2,), (2,)), ((0,), (0,))),
                            preferred_element_type=jnp.float32) * scale + ext
        s = s - jnp.max(s, axis=-1, keepdims=True)
        p = jnp.exp(s)
        p = p * pl.reciprocal(jnp.sum(p, axis=-1, keepdims=True), approx=True)
        ctx = lax.dot_general(p, v_all, (((2,), (1,)), ((0,), (0,))),
                              preferred_element_type=jnp.float32)        # (B*NH, S, hd)

        # reassemble (B*NH, S, hd) -> (B*S, H) with static slices / concats only
        rows = []
        for b in range(B):
            rows.append(jnp.concatenate(
                [ctx[b * NUM_HEADS + hh] for hh in range(NUM_HEADS)], axis=1))   # (S, H)
        ctx_flat = jnp.concatenate(rows, axis=0)                                 # (B*S, H)

        # single lane-dense output projection over concatenated heads
        attn = jnp.dot(ctx_flat, wo_ref[l], preferred_element_type=jnp.float32) + bo_ref[l]
        h1 = _layernorm(attn + hcur, ln1g_ref[l], ln1b_ref[l])

        inter = _gelu_tanh(jnp.dot(h1, wi_ref[l],
                                   preferred_element_type=jnp.float32) + bi_ref[l])
        ff = jnp.dot(inter, wff_ref[l], preferred_element_type=jnp.float32) + bff_ref[l]
        hcur = _layernorm(ff + h1, ln2g_ref[l], ln2b_ref[l])

    # ---- scoring head: per-batch (1,H)@(S,H)^T rows, assembled into one (B,S) store ----
    logit_rows = [_dot_t(wh_ref[...], hcur[b * S:(b + 1) * S]) + bh_ref[...]
                  for b in range(B)]
    o_ref[...] = jnp.concatenate(logit_rows, axis=0).astype(o_ref.dtype)         # (B, S)


# ---------------- wrapper ----------------
_WEIGHT_ORDER = ["w_emb", "b_emb", "pos", "ln_g", "ln_b",
                 "wqkv", "bqkv", "wo", "bo", "ln1g", "ln1b",
                 "wi", "bi", "wff", "bff", "ln2g", "ln2b",
                 "w_head", "b_head"]


def reranker_forward(params, inputs, attention_mask=None):
    B, S, E = inputs.shape
    if attention_mask is None:
        attention_mask = jnp.ones((B, S), jnp.float32)
    attention_mask = attention_mask.astype(jnp.float32)

    wdict = dict(params)
    wdict["pos"] = params["pos_table"][:S]                               # (S, H)
    weights = [wdict[n] for n in _WEIGHT_ORDER]

    # Single grid-less invocation: every operand is placed whole-array in VMEM.
    # (On v7x one could benchmark grid=(B,) with dimension_semantics=("parallel",)
    #  to use both TensorCores; at these shapes the single-step variant wins.)
    logits = pl.pallas_call(
        reranker_kernel,
        out_shape=jax.ShapeDtypeStruct((B, S), jnp.float32),
    )(inputs, attention_mask, *weights)
    return {"logits": logits}                                            # (B, S)


# ---------------- deterministic synthetic parameters ----------------
def init_params(key):
    keys = iter(jax.random.split(key, 64))

    def nrm(shape, scale=0.02):
        return scale * jax.random.normal(next(keys), shape, jnp.float32)

    params = {
        "w_emb": nrm((EMB_SIZE, HIDDEN)),
        "b_emb": nrm((1, HIDDEN)),
        "pos_table": nrm((MAX_POS, HIDDEN)),
        "ln_g": jnp.ones((1, HIDDEN), jnp.float32),
        "ln_b": jnp.zeros((1, HIDDEN), jnp.float32),
        "w_head": nrm((1, HIDDEN)),          # row vector for lane-dense head
        "b_head": nrm((1, 1)),
    }
    L = NUM_LAYERS
    params["wqkv"] = jnp.stack(
        [jnp.concatenate([nrm((HIDDEN, HIDDEN)) for _ in range(3)], axis=-1)
         for _ in range(L)])                                             # (L, H, 3H)
    params["bqkv"] = jnp.stack([nrm((1, 3 * HIDDEN)) for _ in range(L)])
    params["wo"] = jnp.stack([nrm((HIDDEN, HIDDEN)) for _ in range(L)])
    params["bo"] = jnp.stack([nrm((1, HIDDEN)) for _ in range(L)])
    params["ln1g"] = jnp.ones((L, 1, HIDDEN), jnp.float32)
    params["ln1b"] = jnp.zeros((L, 1, HIDDEN), jnp.float32)
    params["wi"] = jnp.stack([nrm((HIDDEN, INTERMEDIATE)) for _ in range(L)])
    params["bi"] = jnp.stack([nrm((1, INTERMEDIATE)) for _ in range(L)])
    params["wff"] = jnp.stack([nrm((INTERMEDIATE, HIDDEN)) for _ in range(L)])
    params["bff"] = jnp.stack([nrm((1, HIDDEN)) for _ in range(L)])
    params["ln2g"] = jnp.ones((L, 1, HIDDEN), jnp.float32)
    params["ln2b"] = jnp.zeros((L, 1, HIDDEN), jnp.float32)
    return params


# ---------------- pure-JAX reference (correctness check) ----------------
def reference_forward(params, inputs, attention_mask):
    B, S, _ = inputs.shape
    x = inputs @ params["w_emb"] + params["b_emb"] + params["pos_table"][:S][None]
    x = _layernorm(x, params["ln_g"], params["ln_b"])
    ext = (1.0 - attention_mask)[:, None, :] * -10000.0                  # (B, 1, S)
    scale = 1.0 / math.sqrt(HEAD_DIM)
    for l in range(NUM_LAYERS):
        qkv = x @ params["wqkv"][l] + params["bqkv"][l]                  # (B, S, 3H)
        q, k, v = jnp.split(qkv, 3, axis=-1)
        q = q.reshape(B, S, NUM_HEADS, HEAD_DIM)
        k = k.reshape(B, S, NUM_HEADS, HEAD_DIM)
        v = v.reshape(B, S, NUM_HEADS, HEAD_DIM)
        s = jnp.einsum("bqhd,bkhd->bhqk", q, k) * scale + ext[:, None]
        p = jax.nn.softmax(s, axis=-1)
        c = jnp.einsum("bhqk,bkhd->bqhd", p, v).reshape(B, S, HIDDEN)
        attn = c @ params["wo"][l] + params["bo"][l]
        h1 = _layernorm(attn + x, params["ln1g"][l], params["ln1b"][l])
        inter = _gelu_tanh(h1 @ params["wi"][l] + params["bi"][l])
        ff = inter @ params["wff"][l] + params["bff"][l]
        x = _layernorm(ff + h1, params["ln2g"][l], params["ln2b"][l])
    logits = jnp.einsum("bsh,h->bs", x, params["w_head"][0]) + params["b_head"][0, 0]
    return logits


if __name__ == "__main__":
    key = jax.random.PRNGKey(0)
    pkey, xkey = jax.random.split(key)
    params = init_params(pkey)
    inputs = jax.random.normal(xkey, (BATCH, SEQ, EMB_SIZE), jnp.float32)
    attention_mask = jnp.ones((BATCH, SEQ), jnp.float32)

    out = reranker_forward(params, inputs, attention_mask)
    logits = jax.block_until_ready(out["logits"])

    assert logits.shape == (BATCH, SEQ), logits.shape
    ref = reference_forward(params, inputs, attention_mask)
    assert jnp.allclose(logits, ref, atol=1e-3, rtol=1e-3), float(jnp.max(jnp.abs(logits - ref)))
    print("KERNEL_OK")
</pallas_src>

<mosaic_0001>
module attributes {stable_mosaic.version = 11 : i64} {
  func.func @reranker_kernel(%arg0: memref<2x8x16xf32, #tpu.memory_space<vmem>>, %arg1: memref<2x8xf32, #tpu.memory_space<vmem>>, %arg2: memref<16x32xf32, #tpu.memory_space<vmem>>, %arg3: memref<1x32xf32, #tpu.memory_space<vmem>>, %arg4: memref<8x32xf32, #tpu.memory_space<vmem>>, %arg5: memref<1x32xf32, #tpu.memory_space<vmem>>, %arg6: memref<1x32xf32, #tpu.memory_space<vmem>>, %arg7: memref<2x32x96xf32, #tpu.memory_space<vmem>>, %arg8: memref<2x1x96xf32, #tpu.memory_space<vmem>>, %arg9: memref<2x32x32xf32, #tpu.memory_space<vmem>>, %arg10: memref<2x1x32xf32, #tpu.memory_space<vmem>>, %arg11: memref<2x1x32xf32, #tpu.memory_space<vmem>>, %arg12: memref<2x1x32xf32, #tpu.memory_space<vmem>>, %arg13: memref<2x32x64xf32, #tpu.memory_space<vmem>>, %arg14: memref<2x1x64xf32, #tpu.memory_space<vmem>>, %arg15: memref<2x64x32xf32, #tpu.memory_space<vmem>>, %arg16: memref<2x1x32xf32, #tpu.memory_space<vmem>>, %arg17: memref<2x1x32xf32, #tpu.memory_space<vmem>>, %arg18: memref<2x1x32xf32, #tpu.memory_space<vmem>>, %arg19: memref<1x32xf32, #tpu.memory_space<vmem>>, %arg20: memref<1x1xf32, #tpu.memory_space<vmem>>, %arg21: memref<2x8xf32, #tpu.memory_space<vmem>>) attributes {dimension_semantics = [], scalar_prefetch = 0 : i64, scratch_operands = 0 : i64, tpu.core_type = #tpu.core_type<tc>} {
    %c0 = arith.constant 0 : index
    %c0_0 = arith.constant 0 : index
    %c0_1 = arith.constant 0 : index
    %0 = vector.load %arg0[%c0, %c0_0, %c0_1] : memref<2x8x16xf32, #tpu.memory_space<vmem>>, vector<2x8x16xf32>
    %1 = vector.shape_cast %0 : vector<2x8x16xf32> to vector<16x16xf32>
    %c0_2 = arith.constant 0 : index
    %c0_3 = arith.constant 0 : index
    %2 = vector.load %arg2[%c0_2, %c0_3] : memref<16x32xf32, #tpu.memory_space<vmem>>, vector<16x32xf32>
    %cst = arith.constant dense<0.000000e+00> : vector<16x32xf32>
    %3 = tpu.matmul %1, %2, %cst {dimension_numbers = #tpu.dot_dimension_numbers<[1], [0], [0], [1], [0, 0, 1, 1], [], []>} : vector<16x16xf32>, vector<16x32xf32>, vector<16x32xf32> -> vector<16x32xf32>
    %c0_4 = arith.constant 0 : index
    %c0_5 = arith.constant 0 : index
    %4 = vector.load %arg4[%c0_4, %c0_5] : memref<8x32xf32, #tpu.memory_space<vmem>>, vector<8x32xf32>
    %5 = tpu.concatenate %4, %4 in 0 : vector<8x32xf32>, vector<8x32xf32> -> vector<16x32xf32>
    %c0_6 = arith.constant 0 : index
    %c0_7 = arith.constant 0 : index
    %6 = vector.load %arg3[%c0_6, %c0_7] : memref<1x32xf32, #tpu.memory_space<vmem>>, vector<1x32xf32>
    %7 = vector.broadcast %6 : vector<1x32xf32> to vector<16x32xf32>
    %8 = arith.addf %3, %7 : vector<16x32xf32>
    %9 = arith.addf %8, %5 : vector<16x32xf32>
    %c0_8 = arith.constant 0 : index
    %c0_9 = arith.constant 0 : index
    %10 = vector.load %arg5[%c0_8, %c0_9] : memref<1x32xf32, #tpu.memory_space<vmem>>, vector<1x32xf32>
    %c0_10 = arith.constant 0 : index
    %c0_11 = arith.constant 0 : index
    %11 = vector.load %arg6[%c0_10, %c0_11] : memref<1x32xf32, #tpu.memory_space<vmem>>, vector<1x32xf32>
    %cst_12 = arith.constant dense<0.000000e+00> : vector<16xf32>
    %12 = vector.multi_reduction <add>, %9, %cst_12 [1] : vector<16x32xf32> to vector<16xf32>
    %13 = vector.shape_cast %12 : vector<16xf32> to vector<16x1xf32>
    %cst_13 = arith.constant 3.200000e+01 : f32
    %14 = vector.broadcast %cst_13 : f32 to vector<16x1xf32>
    %15 = arith.divf %13, %14 : vector<16x1xf32>
    %16 = vector.broadcast %15 : vector<16x1xf32> to vector<16x32xf32>
    %17 = arith.subf %9, %16 : vector<16x32xf32>
    %18 = arith.mulf %17, %17 : vector<16x32xf32>
    %cst_14 = arith.constant dense<0.000000e+00> : vector<16xf32>
    %19 = vector.multi_reduction <add>, %18, %cst_14 [1] : vector<16x32xf32> to vector<16xf32>
    %20 = vector.shape_cast %19 : vector<16xf32> to vector<16x1xf32>
    %cst_15 = arith.constant 3.200000e+01 : f32
    %21 = vector.broadcast %cst_15 : f32 to vector<16x1xf32>
    %22 = arith.divf %20, %21 : vector<16x1xf32>
    %23 = vector.broadcast %15 : vector<16x1xf32> to vector<16x32xf32>
    %24 = arith.subf %9, %23 : vector<16x32xf32>
    %cst_16 = arith.constant 9.99999996E-13 : f32
    %25 = vector.broadcast %cst_16 : f32 to vector<16x1xf32>
    %26 = arith.addf %22, %25 : vector<16x1xf32>
    %27 = math.rsqrt %26 : vector<16x1xf32>
    %28 = vector.broadcast %27 : vector<16x1xf32> to vector<16x32xf32>
    %29 = arith.mulf %24, %28 : vector<16x32xf32>
    %30 = vector.broadcast %10 : vector<1x32xf32> to vector<16x32xf32>
    %31 = arith.mulf %29, %30 : vector<16x32xf32>
    %32 = vector.broadcast %11 : vector<1x32xf32> to vector<16x32xf32>
    %33 = arith.addf %31, %32 : vector<16x32xf32>
    %c0_17 = arith.constant 0 : index
    %c0_18 = arith.constant 0 : index
    %34 = vector.load %arg1[%c0_17, %c0_18] : memref<2x8xf32, #tpu.memory_space<vmem>>, vector<2x8xf32>
    %cst_19 = arith.constant 1.000000e+00 : f32
    %35 = vector.broadcast %cst_19 : f32 to vector<2x8xf32>
    %36 = arith.subf %35, %34 : vector<2x8xf32>
    %cst_20 = arith.constant -1.000000e+04 : f32
    %37 = vector.broadcast %cst_20 : f32 to vector<2x8xf32>
    %38 = arith.mulf %36, %37 : vector<2x8xf32>
    %39 = vector.extract_strided_slice %38 {offsets = [0, 0], sizes = [1, 8], strides = [1, 1]} : vector<2x8xf32> to vector<1x8xf32>
    %40 = vector.extract_strided_slice %38 {offsets = [1, 0], sizes = [1, 8], strides = [1, 1]} : vector<2x8xf32> to vector<1x8xf32>
    %41 = vector.shape_cast %39 : vector<1x8xf32> to vector<1x1x8xf32>
    %42 = vector.shape_cast %39 : vector<1x8xf32> to vector<1x1x8xf32>
    %43 = vector.shape_cast %39 : vector<1x8xf32> to vector<1x1x8xf32>
    %44 = vector.shape_cast %39 : vector<1x8xf32> to vector<1x1x8xf32>
    %45 = vector.shape_cast %40 : vector<1x8xf32> to vector<1x1x8xf32>
    %46 = vector.shape_cast %40 : vector<1x8xf32> to vector<1x1x8xf32>
    %47 = vector.shape_cast %40 : vector<1x8xf32> to vector<1x1x8xf32>
    %48 = vector.shape_cast %40 : vector<1x8xf32> to vector<1x1x8xf32>
    %49 = tpu.concatenate %41, %42, %43, %44, %45, %46, %47, %48 in 0 : vector<1x1x8xf32>, vector<1x1x8xf32>, vector<1x1x8xf32>, vector<1x1x8xf32>, vector<1x1x8xf32>, vector<1x1x8xf32>, vector<1x1x8xf32>, vector<1x1x8xf32> -> vector<8x1x8xf32>
    %c0_21 = arith.constant 0 : index
    %c0_22 = arith.constant 0 : index
    %c0_23 = arith.constant 0 : index
    %50 = vector.load %arg7[%c0_21, %c0_22, %c0_23] : memref<2x32x96xf32, #tpu.memory_space<vmem>>, vector<1x32x96xf32>
    %51 = vector.shape_cast %50 : vector<1x32x96xf32> to vector<32x96xf32>
    %cst_24 = arith.constant dense<0.000000e+00> : vector<16x96xf32>
    %52 = tpu.matmul %33, %51, %cst_24 {dimension_numbers = #tpu.dot_dimension_numbers<[1], [0], [0], [1], [0, 0, 1, 1], [], []>} : vector<16x32xf32>, vector<32x96xf32>, vector<16x96xf32> -> vector<16x96xf32>
    %c0_25 = arith.constant 0 : index
    %c0_26 = arith.constant 0 : index
    %c0_27 = arith.constant 0 : index
    %53 = vector.load %arg8[%c0_25, %c0_26, %c0_27] : memref<2x1x96xf32, #tpu.memory_space<vmem>>, vector<1x1x96xf32>
    %54 = vector.shape_cast %53 : vector<1x1x96xf32> to vector<1x96xf32>
    %55 = vector.broadcast %54 : vector<1x96xf32> to vector<16x96xf32>
    %56 = arith.addf %52, %55 : vector<16x96xf32>
    %57 = vector.extract_strided_slice %56 {offsets = [0, 0], sizes = [8, 8], strides = [1, 1]} : vector<16x96xf32> to vector<8x8xf32>
    %58 = vector.extract_strided_slice %56 {offsets = [0, 32], sizes = [8, 8], strides = [1, 1]} : vector<16x96xf32> to vector<8x8xf32>
    %59 = vector.extract_strided_slice %56 {offsets = [0, 64], sizes = [8, 8], strides = [1, 1]} : vector<16x96xf32> to vector<8x8xf32>
    %60 = vector.extract_strided_slice %56 {offsets = [0, 8], sizes = [8, 8], strides = [1, 1]} : vector<16x96xf32> to vector<8x8xf32>
    %61 = vector.extract_strided_slice %56 {offsets = [0, 40], sizes = [8, 8], strides = [1, 1]} : vector<16x96xf32> to vector<8x8xf32>
    %62 = vector.extract_strided_slice %56 {offsets = [0, 72], sizes = [8, 8], strides = [1, 1]} : vector<16x96xf32> to vector<8x8xf32>
    %63 = vector.extract_strided_slice %56 {offsets = [0, 16], sizes = [8, 8], strides = [1, 1]} : vector<16x96xf32> to vector<8x8xf32>
    %64 = vector.extract_strided_slice %56 {offsets = [0, 48], sizes = [8, 8], strides = [1, 1]} : vector<16x96xf32> to vector<8x8xf32>
    %65 = vector.extract_strided_slice %56 {offsets = [0, 80], sizes = [8, 8], strides = [1, 1]} : vector<16x96xf32> to vector<8x8xf32>
    %66 = vector.extract_strided_slice %56 {offsets = [0, 24], sizes = [8, 8], strides = [1, 1]} : vector<16x96xf32> to vector<8x8xf32>
    %67 = vector.extract_strided_slice %56 {offsets = [0, 56], sizes = [8, 8], strides = [1, 1]} : vector<16x96xf32> to vector<8x8xf32>
    %68 = vector.extract_strided_slice %56 {offsets = [0, 88], sizes = [8, 8], strides = [1, 1]} : vector<16x96xf32> to vector<8x8xf32>
    %69 = vector.extract_strided_slice %56 {offsets = [8, 0], sizes = [8, 8], strides = [1, 1]} : vector<16x96xf32> to vector<8x8xf32>
    %70 = vector.extract_strided_slice %56 {offsets = [8, 32], sizes = [8, 8], strides = [1, 1]} : vector<16x96xf32> to vector<8x8xf32>
    %71 = vector.extract_strided_slice %56 {offsets = [8, 64], sizes = [8, 8], strides = [1, 1]} : vector<16x96xf32> to vector<8x8xf32>
    %72 = vector.extract_strided_slice %56 {offsets = [8, 8], sizes = [8, 8], strides = [1, 1]} : vector<16x96xf32> to vector<8x8xf32>
    %73 = vector.extract_strided_slice %56 {offsets = [8, 40], sizes = [8, 8], strides = [1, 1]} : vector<16x96xf32> to vector<8x8xf32>
    %74 = vector.extract_strided_slice %56 {offsets = [8, 72], sizes = [8, 8], strides = [1, 1]} : vector<16x96xf32> to vector<8x8xf32>
    %75 = vector.extract_strided_slice %56 {offsets = [8, 16], sizes = [8, 8], strides = [1, 1]} : vector<16x96xf32> to vector<8x8xf32>
    %76 = vector.extract_strided_slice %56 {offsets = [8, 48], sizes = [8, 8], strides = [1, 1]} : vector<16x96xf32> to vector<8x8xf32>
    %77 = vector.extract_strided_slice %56 {offsets = [8, 80], sizes = [8, 8], strides = [1, 1]} : vector<16x96xf32> to vector<8x8xf32>
    %78 = vector.extract_strided_slice %56 {offsets = [8, 24], sizes = [8, 8], strides = [1, 1]} : vector<16x96xf32> to vector<8x8xf32>
    %79 = vector.extract_strided_slice %56 {offsets = [8, 56], sizes = [8, 8], strides = [1, 1]} : vector<16x96xf32> to vector<8x8xf32>
    %80 = vector.extract_strided_slice %56 {offsets = [8, 88], sizes = [8, 8], strides = [1, 1]} : vector<16x96xf32> to vector<8x8xf32>
    %81 = vector.shape_cast %57 : vector<8x8xf32> to vector<1x8x8xf32>
    %82 = vector.shape_cast %60 : vector<8x8xf32> to vector<1x8x8xf32>
    %83 = vector.shape_cast %63 : vector<8x8xf32> to vector<1x8x8xf32>
    %84 = vector.shape_cast %66 : vector<8x8xf32> to vector<1x8x8xf32>
    %85 = vector.shape_cast %69 : vector<8x8xf32> to vector<1x8x8xf32>
    %86 = vector.shape_cast %72 : vector<8x8xf32> to vector<1x8x8xf32>
    %87 = vector.shape_cast %75 : vector<8x8xf32> to vector<1x8x8xf32>
    %88 = vector.shape_cast %78 : vector<8x8xf32> to vector<1x8x8xf32>
    %89 = tpu.concatenate %81, %82, %83, %84, %85, %86, %87, %88 in 0 : vector<1x8x8xf32>, vector<1x8x8xf32>, vector<1x8x8xf32>, vector<1x8x8xf32>, vector<1x8x8xf32>, vector<1x8x8xf32>, vector<1x8x8xf32>, vector<1x8x8xf32> -> vector<8x8x8xf32>
    %90 = vector.shape_cast %58 : vector<8x8xf32> to vector<1x8x8xf32>
    %91 = vector.shape_cast %61 : vector<8x8xf32> to vector<1x8x8xf32>
    %92 = vector.shape_cast %64 : vector<8x8xf32> to vector<1x8x8xf32>
    %93 = vector.shape_cast %67 : vector<8x8xf32> to vector<1x8x8xf32>
    %94 = vector.shape_cast %70 : vector<8x8xf32> to vector<1x8x8xf32>
    %95 = vector.shape_cast %73 : vector<8x8xf32> to vector<1x8x8xf32>
    %96 = vector.shape_cast %76 : vector<8x8xf32> to vector<1x8x8xf32>
    %97 = vector.shape_cast %79 : vector<8x8xf32> to vector<1x8x8xf32>
    %98 = tpu.concatenate %90, %91, %92, %93, %94, %95, %96, %97 in 0 : vector<1x8x8xf32>, vector<1x8x8xf32>, vector<1x8x8xf32>, vector<1x8x8xf32>, vector<1x8x8xf32>, vector<1x8x8xf32>, vector<1x8x8xf32>, vector<1x8x8xf32> -> vector<8x8x8xf32>
    %99 = vector.shape_cast %59 : vector<8x8xf32> to vector<1x8x8xf32>
    %100 = vector.shape_cast %62 : vector<8x8xf32> to vector<1x8x8xf32>
    %101 = vector.shape_cast %65 : vector<8x8xf32> to vector<1x8x8xf32>
    %102 = vector.shape_cast %68 : vector<8x8xf32> to vector<1x8x8xf32>
    %103 = vector.shape_cast %71 : vector<8x8xf32> to vector<1x8x8xf32>
    %104 = vector.shape_cast %74 : vector<8x8xf32> to vector<1x8x8xf32>
    %105 = vector.shape_cast %77 : vector<8x8xf32> to vector<1x8x8xf32>
    %106 = vector.shape_cast %80 : vector<8x8xf32> to vector<1x8x8xf32>
    %107 = tpu.concatenate %99, %100, %101, %102, %103, %104, %105, %106 in 0 : vector<1x8x8xf32>, vector<1x8x8xf32>, vector<1x8x8xf32>, vector<1x8x8xf32>, vector<1x8x8xf32>, vector<1x8x8xf32>, vector<1x8x8xf32>, vector<1x8x8xf32> -> vector<8x8x8xf32>
    %cst_28 = arith.constant dense<0.000000e+00> : vector<8x8x8xf32>
    %108 = tpu.matmul %89, %98, %cst_28 {dimension_numbers = #tpu.dot_dimension_numbers<[2], [2], [1], [1], [0, 0, 0, 1, 1, 1], [0], [0]>} : vector<8x8x8xf32>, vector<8x8x8xf32>, vector<8x8x8xf32> -> vector<8x8x8xf32>
    %cst_29 = arith.constant 0.353553385 : f32
    %109 = vector.broadcast %cst_29 : f32 to vector<8x8x8xf32>
    %110 = arith.mulf %108, %109 : vector<8x8x8xf32>
    %111 = vector.broadcast %49 : vector<8x1x8xf32> to vector<8x8x8xf32>
    %112 = arith.addf %110, %111 : vector<8x8x8xf32>
    %cst_30 = arith.constant dense<0xFF800000> : vector<8x8xf32>
    %113 = vector.multi_reduction <maximumf>, %112, %cst_30 [2] : vector<8x8x8xf32> to vector<8x8xf32>
    %114 = vector.shape_cast %113 : vector<8x8xf32> to vector<8x8x1xf32>
    %115 = vector.broadcast %114 : vector<8x8x1xf32> to vector<8x8x8xf32>
    %116 = arith.subf %112, %115 : vector<8x8x8xf32>
    %117 = math.exp %116 : vector<8x8x8xf32>
    %cst_31 = arith.constant dense<0.000000e+00> : vector<8x8xf32>
    %118 = vector.multi_reduction <add>, %117, %cst_31 [2] : vector<8x8x8xf32> to vector<8x8xf32>
    %119 = vector.shape_cast %118 : vector<8x8xf32> to vector<8x8x1xf32>
    %120 = tpu.reciprocal %119 {approx = true} : vector<8x8x1xf32> -> vector<8x8x1xf32>
    %121 = vector.broadcast %120 : vector<8x8x1xf32> to vector<8x8x8xf32>
    %122 = arith.mulf %117, %121 : vector<8x8x8xf32>
    %cst_32 = arith.constant dense<0.000000e+00> : vector<8x8x8xf32>
    %123 = tpu.matmul %122, %107, %cst_32 {dimension_numbers = #tpu.dot_dimension_numbers<[2], [1], [1], [2], [0, 0, 0, 1, 1, 2], [0], [0]>} : vector<8x8x8xf32>, vector<8x8x8xf32>, vector<8x8x8xf32> -> vector<8x8x8xf32>
    %124 = vector.extract_strided_slice %123 {offsets = [0, 0, 0], sizes = [1, 8, 8], strides = [1, 1, 1]} : vector<8x8x8xf32> to vector<1x8x8xf32>
    %125 = vector.shape_cast %124 : vector<1x8x8xf32> to vector<8x8xf32>
    %126 = vector.extract_strided_slice %123 {offsets = [1, 0, 0], sizes = [1, 8, 8], strides = [1, 1, 1]} : vector<8x8x8xf32> to vector<1x8x8xf32>
    %127 = vector.shape_cast %126 : vector<1x8x8xf32> to vector<8x8xf32>
    %128 = vector.extract_strided_slice %123 {offsets = [2, 0, 0], sizes = [1, 8, 8], strides = [1, 1, 1]} : vector<8x8x8xf32> to vector<1x8x8xf32>
    %129 = vector.shape_cast %128 : vector<1x8x8xf32> to vector<8x8xf32>
    %130 = vector.extract_strided_slice %123 {offsets = [3, 0, 0], sizes = [1, 8, 8], strides = [1, 1, 1]} : vector<8x8x8xf32> to vector<1x8x8xf32>
    %131 = vector.shape_cast %130 : vector<1x8x8xf32> to vector<8x8xf32>
    %132 = tpu.concatenate %125, %127, %129, %131 in 1 : vector<8x8xf32>, vector<8x8xf32>, vector<8x8xf32>, vector<8x8xf32> -> vector<8x32xf32>
    %133 = vector.extract_strided_slice %123 {offsets = [4, 0, 0], sizes = [1, 8, 8], strides = [1, 1, 1]} : vector<8x8x8xf32> to vector<1x8x8xf32>
    %134 = vector.shape_cast %133 : vector<1x8x8xf32> to vector<8x8xf32>
    %135 = vector.extract_strided_slice %123 {offsets = [5, 0, 0], sizes = [1, 8, 8], strides = [1, 1, 1]} : vector<8x8x8xf32> to vector<1x8x8xf32>
    %136 = vector.shape_cast %135 : vector<1x8x8xf32> to vector<8x8xf32>
    %137 = vector.extract_strided_slice %123 {offsets = [6, 0, 0], sizes = [1, 8, 8], strides = [1, 1, 1]} : vector<8x8x8xf32> to vector<1x8x8xf32>
    %138 = vector.shape_cast %137 : vector<1x8x8xf32> to vector<8x8xf32>
    %139 = vector.extract_strided_slice %123 {offsets = [7, 0, 0], sizes = [1, 8, 8], strides = [1, 1, 1]} : vector<8x8x8xf32> to vector<1x8x8xf32>
    %140 = vector.shape_cast %139 : vector<1x8x8xf32> to vector<8x8xf32>
    %141 = tpu.concatenate %134, %136, %138, %140 in 1 : vector<8x8xf32>, vector<8x8xf32>, vector<8x8xf32>, vector<8x8xf32> -> vector<8x32xf32>
    %142 = tpu.concatenate %132, %141 in 0 : vector<8x32xf32>, vector<8x32xf32> -> vector<16x32xf32>
    %c0_33 = arith.constant 0 : index
    %c0_34 = arith.constant 0 : index
    %c0_35 = arith.constant 0 : index
    %143 = vector.load %arg9[%c0_33, %c0_34, %c0_35] : memref<2x32x32xf32, #tpu.memory_space<vmem>>, vector<1x32x32xf32>
    %144 = vector.shape_cast %143 : vector<1x32x32xf32> to vector<32x32xf32>
    %cst_36 = arith.constant dense<0.000000e+00> : vector<16x32xf32>
    %145 = tpu.matmul %142, %144, %cst_36 {dimension_numbers = #tpu.dot_dimension_numbers<[1], [0], [0], [1], [0, 0, 1, 1], [], []>} : vector<16x32xf32>, vector<32x32xf32>, vector<16x32xf32> -> vector<16x32xf32>
    %c0_37 = arith.constant 0 : index
    %c0_38 = arith.constant 0 : index
    %c0_39 = arith.constant 0 : index
    %146 = vector.load %arg10[%c0_37, %c0_38, %c0_39] : memref<2x1x32xf32, #tpu.memory_space<vmem>>, vector<1x1x32xf32>
    %147 = vector.shape_cast %146 : vector<1x1x32xf32> to vector<1x32xf32>
    %148 = vector.broadcast %147 : vector<1x32xf32> to vector<16x32xf32>
    %149 = arith.addf %145, %148 : vector<16x32xf32>
    %150 = arith.addf %149, %33 : vector<16x32xf32>
    %c0_40 = arith.constant 0 : index
    %c0_41 = arith.constant 0 : index
    %c0_42 = arith.constant 0 : index
    %151 = vector.load %arg11[%c0_40, %c0_41, %c0_42] : memref<2x1x32xf32, #tpu.memory_space<vmem>>, vector<1x1x32xf32>
    %152 = vector.shape_cast %151 : vector<1x1x32xf32> to vector<1x32xf32>
    %c0_43 = arith.constant 0 : index
    %c0_44 = arith.constant 0 : index
    %c0_45 = arith.constant 0 : index
    %153 = vector.load %arg12[%c0_43, %c0_44, %c0_45] : memref<2x1x32xf32, #tpu.memory_space<vmem>>, vector<1x1x32xf32>
    %154 = vector.shape_cast %153 : vector<1x1x32xf32> to vector<1x32xf32>
    %cst_46 = arith.constant dense<0.000000e+00> : vector<16xf32>
    %155 = vector.multi_reduction <add>, %150, %cst_46 [1] : vector<16x32xf32> to vector<16xf32>
    %156 = vector.shape_cast %155 : vector<16xf32> to vector<16x1xf32>
    %cst_47 = arith.constant 3.200000e+01 : f32
    %157 = vector.broadcast %cst_47 : f32 to vector<16x1xf32>
    %158 = arith.divf %156, %157 : vector<16x1xf32>
    %159 = vector.broadcast %158 : vector<16x1xf32> to vector<16x32xf32>
    %160 = arith.subf %150, %159 : vector<16x32xf32>
    %161 = arith.mulf %160, %160 : vector<16x32xf32>
    %cst_48 = arith.constant dense<0.000000e+00> : vector<16xf32>
    %162 = vector.multi_reduction <add>, %161, %cst_48 [1] : vector<16x32xf32> to vector<16xf32>
    %163 = vector.shape_cast %162 : vector<16xf32> to vector<16x1xf32>
    %cst_49 = arith.constant 3.200000e+01 : f32
    %164 = vector.broadcast %cst_49 : f32 to vector<16x1xf32>
    %165 = arith.divf %163, %164 : vector<16x1xf32>
    %166 = vector.broadcast %158 : vector<16x1xf32> to vector<16x32xf32>
    %167 = arith.subf %150, %166 : vector<16x32xf32>
    %cst_50 = arith.constant 9.99999996E-13 : f32
    %168 = vector.broadcast %cst_50 : f32 to vector<16x1xf32>
    %169 = arith.addf %165, %168 : vector<16x1xf32>
    %170 = math.rsqrt %169 : vector<16x1xf32>
    %171 = vector.broadcast %170 : vector<16x1xf32> to vector<16x32xf32>
    %172 = arith.mulf %167, %171 : vector<16x32xf32>
    %173 = vector.broadcast %152 : vector<1x32xf32> to vector<16x32xf32>
    %174 = arith.mulf %172, %173 : vector<16x32xf32>
    %175 = vector.broadcast %154 : vector<1x32xf32> to vector<16x32xf32>
    %176 = arith.addf %174, %175 : vector<16x32xf32>
    %c0_51 = arith.constant 0 : index
    %c0_52 = arith.constant 0 : index
    %c0_53 = arith.constant 0 : index
    %177 = vector.load %arg13[%c0_51, %c0_52, %c0_53] : memref<2x32x64xf32, #tpu.memory_space<vmem>>, vector<1x32x64xf32>
    %178 = vector.shape_cast %177 : vector<1x32x64xf32> to vector<32x64xf32>
    %cst_54 = arith.constant dense<0.000000e+00> : vector<16x64xf32>
    %179 = tpu.matmul %176, %178, %cst_54 {dimension_numbers = #tpu.dot_dimension_numbers<[1], [0], [0], [1], [0, 0, 1, 1], [], []>} : vector<16x32xf32>, vector<32x64xf32>, vector<16x64xf32> -> vector<16x64xf32>
    %c0_55 = arith.constant 0 : index
    %c0_56 = arith.constant 0 : index
    %c0_57 = arith.constant 0 : index
    %180 = vector.load %arg14[%c0_55, %c0_56, %c0_57] : memref<2x1x64xf32, #tpu.memory_space<vmem>>, vector<1x1x64xf32>
    %181 = vector.shape_cast %180 : vector<1x1x64xf32> to vector<1x64xf32>
    %182 = vector.broadcast %181 : vector<1x64xf32> to vector<16x64xf32>
    %183 = arith.addf %179, %182 : vector<16x64xf32>
    %cst_58 = arith.constant 5.000000e-01 : f32
    %184 = vector.broadcast %cst_58 : f32 to vector<16x64xf32>
    %185 = arith.mulf %184, %183 : vector<16x64xf32>
    %cst_59 = arith.constant 4.471500e-02 : f32
    %186 = vector.broadcast %cst_59 : f32 to vector<16x64xf32>
    %187 = arith.mulf %186, %183 : vector<16x64xf32>
    %188 = arith.mulf %187, %183 : vector<16x64xf32>
    %189 = arith.mulf %188, %183 : vector<16x64xf32>
    %190 = arith.addf %183, %189 : vector<16x64xf32>
    %cst_60 = arith.constant 0.797884583 : f32
    %191 = vector.broadcast %cst_60 : f32 to vector<16x64xf32>
    %192 = arith.mulf %191, %190 : vector<16x64xf32>
    %193 = math.tanh %192 : vector<16x64xf32>
    %cst_61 = arith.constant 1.000000e+00 : f32
    %194 = vector.broadcast %cst_61 : f32 to vector<16x64xf32>
    %195 = arith.addf %194, %193 : vector<16x64xf32>
    %196 = arith.mulf %185, %195 : vector<16x64xf32>
    %c0_62 = arith.constant 0 : index
    %c0_63 = arith.constant 0 : index
    %c0_64 = arith.constant 0 : index
    %197 = vector.load %arg15[%c0_62, %c0_63, %c0_64] : memref<2x64x32xf32, #tpu.memory_space<vmem>>, vector<1x64x32xf32>
    %198 = vector.shape_cast %197 : vector<1x64x32xf32> to vector<64x32xf32>
    %cst_65 = arith.constant dense<0.000000e+00> : vector<16x32xf32>
    %199 = tpu.matmul %196, %198, %cst_65 {dimension_numbers = #tpu.dot_dimension_numbers<[1], [0], [0], [1], [0, 0, 1, 1], [], []>} : vector<16x64xf32>, vector<64x32xf32>, vector<16x32xf32> -> vector<16x32xf32>
    %c0_66 = arith.constant 0 : index
    %c0_67 = arith.constant 0 : index
    %c0_68 = arith.constant 0 : index
    %200 = vector.load %arg16[%c0_66, %c0_67, %c0_68] : memref<2x1x32xf32, #tpu.memory_space<vmem>>, vector<1x1x32xf32>
    %201 = vector.shape_cast %200 : vector<1x1x32xf32> to vector<1x32xf32>
    %202 = vector.broadcast %201 : vector<1x32xf32> to vector<16x32xf32>
    %203 = arith.addf %199, %202 : vector<16x32xf32>
    %204 = arith.addf %203, %176 : vector<16x32xf32>
    %c0_69 = arith.constant 0 : index
    %c0_70 = arith.constant 0 : index
    %c0_71 = arith.constant 0 : index
    %205 = vector.load %arg17[%c0_69, %c0_70, %c0_71] : memref<2x1x32xf32, #tpu.memory_space<vmem>>, vector<1x1x32xf32>
    %206 = vector.shape_cast %205 : vector<1x1x32xf32> to vector<1x32xf32>
    %c0_72 = arith.constant 0 : index
    %c0_73 = arith.constant 0 : index
    %c0_74 = arith.constant 0 : index
    %207 = vector.load %arg18[%c0_72, %c0_73, %c0_74] : memref<2x1x32xf32, #tpu.memory_space<vmem>>, vector<1x1x32xf32>
    %208 = vector.shape_cast %207 : vector<1x1x32xf32> to vector<1x32xf32>
    %cst_75 = arith.constant dense<0.000000e+00> : vector<16xf32>
    %209 = vector.multi_reduction <add>, %204, %cst_75 [1] : vector<16x32xf32> to vector<16xf32>
    %210 = vector.shape_cast %209 : vector<16xf32> to vector<16x1xf32>
    %cst_76 = arith.constant 3.200000e+01 : f32
    %211 = vector.broadcast %cst_76 : f32 to vector<16x1xf32>
    %212 = arith.divf %210, %211 : vector<16x1xf32>
    %213 = vector.broadcast %212 : vector<16x1xf32> to vector<16x32xf32>
    %214 = arith.subf %204, %213 : vector<16x32xf32>
    %215 = arith.mulf %214, %214 : vector<16x32xf32>
    %cst_77 = arith.constant dense<0.000000e+00> : vector<16xf32>
    %216 = vector.multi_reduction <add>, %215, %cst_77 [1] : vector<16x32xf32> to vector<16xf32>
    %217 = vector.shape_cast %216 : vector<16xf32> to vector<16x1xf32>
    %cst_78 = arith.constant 3.200000e+01 : f32
    %218 = vector.broadcast %cst_78 : f32 to vector<16x1xf32>
    %219 = arith.divf %217, %218 : vector<16x1xf32>
    %220 = vector.broadcast %212 : vector<16x1xf32> to vector<16x32xf32>
    %221 = arith.subf %204, %220 : vector<16x32xf32>
    %cst_79 = arith.constant 9.99999996E-13 : f32
    %222 = vector.broadcast %cst_79 : f32 to vector<16x1xf32>
    %223 = arith.addf %219, %222 : vector<16x1xf32>
    %224 = math.rsqrt %223 : vector<16x1xf32>
    %225 = vector.broadcast %224 : vector<16x1xf32> to vector<16x32xf32>
    %226 = arith.mulf %221, %225 : vector<16x32xf32>
    %227 = vector.broadcast %206 : vector<1x32xf32> to vector<16x32xf32>
    %228 = arith.mulf %226, %227 : vector<16x32xf32>
    %229 = vector.broadcast %208 : vector<1x32xf32> to vector<16x32xf32>
    %230 = arith.addf %228, %229 : vector<16x32xf32>
    %c1 = arith.constant 1 : index
    %c0_80 = arith.constant 0 : index
    %c0_81 = arith.constant 0 : index
    %231 = vector.load %arg7[%c1, %c0_80, %c0_81] : memref<2x32x96xf32, #tpu.memory_space<vmem>>, vector<1x32x96xf32>
    %232 = vector.shape_cast %231 : vector<1x32x96xf32> to vector<32x96xf32>
    %cst_82 = arith.constant dense<0.000000e+00> : vector<16x96xf32>
    %233 = tpu.matmul %230, %232, %cst_82 {dimension_numbers = #tpu.dot_dimension_numbers<[1], [0], [0], [1], [0, 0, 1, 1], [], []>} : vector<16x32xf32>, vector<32x96xf32>, vector<16x96xf32> -> vector<16x96xf32>
    %c1_83 = arith.constant 1 : index
    %c0_84 = arith.constant 0 : index
    %c0_85 = arith.constant 0 : index
    %234 = vector.load %arg8[%c1_83, %c0_84, %c0_85] : memref<2x1x96xf32, #tpu.memory_space<vmem>>, vector<1x1x96xf32>
    %235 = vector.shape_cast %234 : vector<1x1x96xf32> to vector<1x96xf32>
    %236 = vector.broadcast %235 : vector<1x96xf32> to vector<16x96xf32>
    %237 = arith.addf %233, %236 : vector<16x96xf32>
    %238 = vector.extract_strided_slice %237 {offsets = [0, 0], sizes = [8, 8], strides = [1, 1]} : vector<16x96xf32> to vector<8x8xf32>
    %239 = vector.extract_strided_slice %237 {offsets = [0, 32], sizes = [8, 8], strides = [1, 1]} : vector<16x96xf32> to vector<8x8xf32>
    %240 = vector.extract_strided_slice %237 {offsets = [0, 64], sizes = [8, 8], strides = [1, 1]} : vector<16x96xf32> to vector<8x8xf32>
    %241 = vector.extract_strided_slice %237 {offsets = [0, 8], sizes = [8, 8], strides = [1, 1]} : vector<16x96xf32> to vector<8x8xf32>
    %242 = vector.extract_strided_slice %237 {offsets = [0, 40], sizes = [8, 8], strides = [1, 1]} : vector<16x96xf32> to vector<8x8xf32>
    %243 = vector.extract_strided_slice %237 {offsets = [0, 72], sizes = [8, 8], strides = [1, 1]} : vector<16x96xf32> to vector<8x8xf32>
    %244 = vector.extract_strided_slice %237 {offsets = [0, 16], sizes = [8, 8], strides = [1, 1]} : vector<16x96xf32> to vector<8x8xf32>
    %245 = vector.extract_strided_slice %237 {offsets = [0, 48], sizes = [8, 8], strides = [1, 1]} : vector<16x96xf32> to vector<8x8xf32>
    %246 = vector.extract_strided_slice %237 {offsets = [0, 80], sizes = [8, 8], strides = [1, 1]} : vector<16x96xf32> to vector<8x8xf32>
    %247 = vector.extract_strided_slice %237 {offsets = [0, 24], sizes = [8, 8], strides = [1, 1]} : vector<16x96xf32> to vector<8x8xf32>
    %248 = vector.extract_strided_slice %237 {offsets = [0, 56], sizes = [8, 8], strides = [1, 1]} : vector<16x96xf32> to vector<8x8xf32>
    %249 = vector.extract_strided_slice %237 {offsets = [0, 88], sizes = [8, 8], strides = [1, 1]} : vector<16x96xf32> to vector<8x8xf32>
    %250 = vector.extract_strided_slice %237 {offsets = [8, 0], sizes = [8, 8], strides = [1, 1]} : vector<16x96xf32> to vector<8x8xf32>
    %251 = vector.extract_strided_slice %237 {offsets = [8, 32], sizes = [8, 8], strides = [1, 1]} : vector<16x96xf32> to vector<8x8xf32>
    %252 = vector.extract_strided_slice %237 {offsets = [8, 64], sizes = [8, 8], strides = [1, 1]} : vector<16x96xf32> to vector<8x8xf32>
    %253 = vector.extract_strided_slice %237 {offsets = [8, 8], sizes = [8, 8], strides = [1, 1]} : vector<16x96xf32> to vector<8x8xf32>
    %254 = vector.extract_strided_slice %237 {offsets = [8, 40], sizes = [8, 8], strides = [1, 1]} : vector<16x96xf32> to vector<8x8xf32>
    %255 = vector.extract_strided_slice %237 {offsets = [8, 72], sizes = [8, 8], strides = [1, 1]} : vector<16x96xf32> to vector<8x8xf32>
    %256 = vector.extract_strided_slice %237 {offsets = [8, 16], sizes = [8, 8], strides = [1, 1]} : vector<16x96xf32> to vector<8x8xf32>
    %257 = vector.extract_strided_slice %237 {offsets = [8, 48], sizes = [8, 8], strides = [1, 1]} : vector<16x96xf32> to vector<8x8xf32>
    %258 = vector.extract_strided_slice %237 {offsets = [8, 80], sizes = [8, 8], strides = [1, 1]} : vector<16x96xf32> to vector<8x8xf32>
    %259 = vector.extract_strided_slice %237 {offsets = [8, 24], sizes = [8, 8], strides = [1, 1]} : vector<16x96xf32> to vector<8x8xf32>
    %260 = vector.extract_strided_slice %237 {offsets = [8, 56], sizes = [8, 8], strides = [1, 1]} : vector<16x96xf32> to vector<8x8xf32>
    %261 = vector.extract_strided_slice %237 {offsets = [8, 88], sizes = [8, 8], strides = [1, 1]} : vector<16x96xf32> to vector<8x8xf32>
    %262 = vector.shape_cast %238 : vector<8x8xf32> to vector<1x8x8xf32>
    %263 = vector.shape_cast %241 : vector<8x8xf32> to vector<1x8x8xf32>
    %264 = vector.shape_cast %244 : vector<8x8xf32> to vector<1x8x8xf32>
    %265 = vector.shape_cast %247 : vector<8x8xf32> to vector<1x8x8xf32>
    %266 = vector.shape_cast %250 : vector<8x8xf32> to vector<1x8x8xf32>
    %267 = vector.shape_cast %253 : vector<8x8xf32> to vector<1x8x8xf32>
    %268 = vector.shape_cast %256 : vector<8x8xf32> to vector<1x8x8xf32>
    %269 = vector.shape_cast %259 : vector<8x8xf32> to vector<1x8x8xf32>
    %270 = tpu.concatenate %262, %263, %264, %265, %266, %267, %268, %269 in 0 : vector<1x8x8xf32>, vector<1x8x8xf32>, vector<1x8x8xf32>, vector<1x8x8xf32>, vector<1x8x8xf32>, vector<1x8x8xf32>, vector<1x8x8xf32>, vector<1x8x8xf32> -> vector<8x8x8xf32>
    %271 = vector.shape_cast %239 : vector<8x8xf32> to vector<1x8x8xf32>
    %272 = vector.shape_cast %242 : vector<8x8xf32> to vector<1x8x8xf32>
    %273 = vector.shape_cast %245 : vector<8x8xf32> to vector<1x8x8xf32>
    %274 = vector.shape_cast %248 : vector<8x8xf32> to vector<1x8x8xf32>
    %275 = vector.shape_cast %251 : vector<8x8xf32> to vector<1x8x8xf32>
    %276 = vector.shape_cast %254 : vector<8x8xf32> to vector<1x8x8xf32>
    %277 = vector.shape_cast %257 : vector<8x8xf32> to vector<1x8x8xf32>
    %278 = vector.shape_cast %260 : vector<8x8xf32> to vector<1x8x8xf32>
    %279 = tpu.concatenate %271, %272, %273, %274, %275, %276, %277, %278 in 0 : vector<1x8x8xf32>, vector<1x8x8xf32>, vector<1x8x8xf32>, vector<1x8x8xf32>, vector<1x8x8xf32>, vector<1x8x8xf32>, vector<1x8x8xf32>, vector<1x8x8xf32> -> vector<8x8x8xf32>
    %280 = vector.shape_cast %240 : vector<8x8xf32> to vector<1x8x8xf32>
    %281 = vector.shape_cast %243 : vector<8x8xf32> to vector<1x8x8xf32>
    %282 = vector.shape_cast %246 : vector<8x8xf32> to vector<1x8x8xf32>
    %283 = vector.shape_cast %249 : vector<8x8xf32> to vector<1x8x8xf32>
    %284 = vector.shape_cast %252 : vector<8x8xf32> to vector<1x8x8xf32>
    %285 = vector.shape_cast %255 : vector<8x8xf32> to vector<1x8x8xf32>
    %286 = vector.shape_cast %258 : vector<8x8xf32> to vector<1x8x8xf32>
    %287 = vector.shape_cast %261 : vector<8x8xf32> to vector<1x8x8xf32>
    %288 = tpu.concatenate %280, %281, %282, %283, %284, %285, %286, %287 in 0 : vector<1x8x8xf32>, vector<1x8x8xf32>, vector<1x8x8xf32>, vector<1x8x8xf32>, vector<1x8x8xf32>, vector<1x8x8xf32>, vector<1x8x8xf32>, vector<1x8x8xf32> -> vector<8x8x8xf32>
    %cst_86 = arith.constant dense<0.000000e+00> : vector<8x8x8xf32>
    %289 = tpu.matmul %270, %279, %cst_86 {dimension_numbers = #tpu.dot_dimension_numbers<[2], [2], [1], [1], [0, 0, 0, 1, 1, 1], [0], [0]>} : vector<8x8x8xf32>, vector<8x8x8xf32>, vector<8x8x8xf32> -> vector<8x8x8xf32>
    %cst_87 = arith.constant 0.353553385 : f32
    %290 = vector.broadcast %cst_87 : f32 to vector<8x8x8xf32>
    %291 = arith.mulf %289, %290 : vector<8x8x8xf32>
    %292 = vector.broadcast %49 : vector<8x1x8xf32> to vector<8x8x8xf32>
    %293 = arith.addf %291, %292 : vector<8x8x8xf32>
    %cst_88 = arith.constant dense<0xFF800000> : vector<8x8xf32>
    %294 = vector.multi_reduction <maximumf>, %293, %cst_88 [2] : vector<8x8x8xf32> to vector<8x8xf32>
    %295 = vector.shape_cast %294 : vector<8x8xf32> to vector<8x8x1xf32>
    %296 = vector.broadcast %295 : vector<8x8x1xf32> to vector<8x8x8xf32>
    %297 = arith.subf %293, %296 : vector<8x8x8xf32>
    %298 = math.exp %297 : vector<8x8x8xf32>
    %cst_89 = arith.constant dense<0.000000e+00> : vector<8x8xf32>
    %299 = vector.multi_reduction <add>, %298, %cst_89 [2] : vector<8x8x8xf32> to vector<8x8xf32>
    %300 = vector.shape_cast %299 : vector<8x8xf32> to vector<8x8x1xf32>
    %301 = tpu.reciprocal %300 {approx = true} : vector<8x8x1xf32> -> vector<8x8x1xf32>
    %302 = vector.broadcast %301 : vector<8x8x1xf32> to vector<8x8x8xf32>
    %303 = arith.mulf %298, %302 : vector<8x8x8xf32>
    %cst_90 = arith.constant dense<0.000000e+00> : vector<8x8x8xf32>
    %304 = tpu.matmul %303, %288, %cst_90 {dimension_numbers = #tpu.dot_dimension_numbers<[2], [1], [1], [2], [0, 0, 0, 1, 1, 2], [0], [0]>} : vector<8x8x8xf32>, vector<8x8x8xf32>, vector<8x8x8xf32> -> vector<8x8x8xf32>
    %305 = vector.extract_strided_slice %304 {offsets = [0, 0, 0], sizes = [1, 8, 8], strides = [1, 1, 1]} : vector<8x8x8xf32> to vector<1x8x8xf32>
    %306 = vector.shape_cast %305 : vector<1x8x8xf32> to vector<8x8xf32>
    %307 = vector.extract_strided_slice %304 {offsets = [1, 0, 0], sizes = [1, 8, 8], strides = [1, 1, 1]} : vector<8x8x8xf32> to vector<1x8x8xf32>
    %308 = vector.shape_cast %307 : vector<1x8x8xf32> to vector<8x8xf32>
    %309 = vector.extract_strided_slice %304 {offsets = [2, 0, 0], sizes = [1, 8, 8], strides = [1, 1, 1]} : vector<8x8x8xf32> to vector<1x8x8xf32>
    %310 = vector.shape_cast %309 : vector<1x8x8xf32> to vector<8x8xf32>
    %311 = vector.extract_strided_slice %304 {offsets = [3, 0, 0], sizes = [1, 8, 8], strides = [1, 1, 1]} : vector<8x8x8xf32> to vector<1x8x8xf32>
    %312 = vector.shape_cast %311 : vector<1x8x8xf32> to vector<8x8xf32>
    %313 = tpu.concatenate %306, %308, %310, %312 in 1 : vector<8x8xf32>, vector<8x8xf32>, vector<8x8xf32>, vector<8x8xf32> -> vector<8x32xf32>
    %314 = vector.extract_strided_slice %304 {offsets = [4, 0, 0], sizes = [1, 8, 8], strides = [1, 1, 1]} : vector<8x8x8xf32> to vector<1x8x8xf32>
    %315 = vector.shape_cast %314 : vector<1x8x8xf32> to vector<8x8xf32>
    %316 = vector.extract_strided_slice %304 {offsets = [5, 0, 0], sizes = [1, 8, 8], strides = [1, 1, 1]} : vector<8x8x8xf32> to vector<1x8x8xf32>
    %317 = vector.shape_cast %316 : vector<1x8x8xf32> to vector<8x8xf32>
    %318 = vector.extract_strided_slice %304 {offsets = [6, 0, 0], sizes = [1, 8, 8], strides = [1, 1, 1]} : vector<8x8x8xf32> to vector<1x8x8xf32>
    %319 = vector.shape_cast %318 : vector<1x8x8xf32> to vector<8x8xf32>
    %320 = vector.extract_strided_slice %304 {offsets = [7, 0, 0], sizes = [1, 8, 8], strides = [1, 1, 1]} : vector<8x8x8xf32> to vector<1x8x8xf32>
    %321 = vector.shape_cast %320 : vector<1x8x8xf32> to vector<8x8xf32>
    %322 = tpu.concatenate %315, %317, %319, %321 in 1 : vector<8x8xf32>, vector<8x8xf32>, vector<8x8xf32>, vector<8x8xf32> -> vector<8x32xf32>
    %323 = tpu.concatenate %313, %322 in 0 : vector<8x32xf32>, vector<8x32xf32> -> vector<16x32xf32>
    %c1_91 = arith.constant 1 : index
    %c0_92 = arith.constant 0 : index
    %c0_93 = arith.constant 0 : index
    %324 = vector.load %arg9[%c1_91, %c0_92, %c0_93] : memref<2x32x32xf32, #tpu.memory_space<vmem>>, vector<1x32x32xf32>
    %325 = vector.shape_cast %324 : vector<1x32x32xf32> to vector<32x32xf32>
    %cst_94 = arith.constant dense<0.000000e+00> : vector<16x32xf32>
    %326 = tpu.matmul %323, %325, %cst_94 {dimension_numbers = #tpu.dot_dimension_numbers<[1], [0], [0], [1], [0, 0, 1, 1], [], []>} : vector<16x32xf32>, vector<32x32xf32>, vector<16x32xf32> -> vector<16x32xf32>
    %c1_95 = arith.constant 1 : index
    %c0_96 = arith.constant 0 : index
    %c0_97 = arith.constant 0 : index
    %327 = vector.load %arg10[%c1_95, %c0_96, %c0_97] : memref<2x1x32xf32, #tpu.memory_space<vmem>>, vector<1x1x32xf32>
    %328 = vector.shape_cast %327 : vector<1x1x32xf32> to vector<1x32xf32>
    %329 = vector.broadcast %328 : vector<1x32xf32> to vector<16x32xf32>
    %330 = arith.addf %326, %329 : vector<16x32xf32>
    %331 = arith.addf %330, %230 : vector<16x32xf32>
    %c1_98 = arith.constant 1 : index
    %c0_99 = arith.constant 0 : index
    %c0_100 = arith.constant 0 : index
    %332 = vector.load %arg11[%c1_98, %c0_99, %c0_100] : memref<2x1x32xf32, #tpu.memory_space<vmem>>, vector<1x1x32xf32>
    %333 = vector.shape_cast %332 : vector<1x1x32xf32> to vector<1x32xf32>
    %c1_101 = arith.constant 1 : index
    %c0_102 = arith.constant 0 : index
    %c0_103 = arith.constant 0 : index
    %334 = vector.load %arg12[%c1_101, %c0_102, %c0_103] : memref<2x1x32xf32, #tpu.memory_space<vmem>>, vector<1x1x32xf32>
    %335 = vector.shape_cast %334 : vector<1x1x32xf32> to vector<1x32xf32>
    %cst_104 = arith.constant dense<0.000000e+00> : vector<16xf32>
    %336 = vector.multi_reduction <add>, %331, %cst_104 [1] : vector<16x32xf32> to vector<16xf32>
    %337 = vector.shape_cast %336 : vector<16xf32> to vector<16x1xf32>
    %cst_105 = arith.constant 3.200000e+01 : f32
    %338 = vector.broadcast %cst_105 : f32 to vector<16x1xf32>
    %339 = arith.divf %337, %338 : vector<16x1xf32>
    %340 = vector.broadcast %339 : vector<16x1xf32> to vector<16x32xf32>
    %341 = arith.subf %331, %340 : vector<16x32xf32>
    %342 = arith.mulf %341, %341 : vector<16x32xf32>
    %cst_106 = arith.constant dense<0.000000e+00> : vector<16xf32>
    %343 = vector.multi_reduction <add>, %342, %cst_106 [1] : vector<16x32xf32> to vector<16xf32>
    %344 = vector.shape_cast %343 : vector<16xf32> to vector<16x1xf32>
    %cst_107 = arith.constant 3.200000e+01 : f32
    %345 = vector.broadcast %cst_107 : f32 to vector<16x1xf32>
    %346 = arith.divf %344, %345 : vector<16x1xf32>
    %347 = vector.broadcast %339 : vector<16x1xf32> to vector<16x32xf32>
    %348 = arith.subf %331, %347 : vector<16x32xf32>
    %cst_108 = arith.constant 9.99999996E-13 : f32
    %349 = vector.broadcast %cst_108 : f32 to vector<16x1xf32>
    %350 = arith.addf %346, %349 : vector<16x1xf32>
    %351 = math.rsqrt %350 : vector<16x1xf32>
    %352 = vector.broadcast %351 : vector<16x1xf32> to vector<16x32xf32>
    %353 = arith.mulf %348, %352 : vector<16x32xf32>
    %354 = vector.broadcast %333 : vector<1x32xf32> to vector<16x32xf32>
    %355 = arith.mulf %353, %354 : vector<16x32xf32>
    %356 = vector.broadcast %335 : vector<1x32xf32> to vector<16x32xf32>
    %357 = arith.addf %355, %356 : vector<16x32xf32>
    %c1_109 = arith.constant 1 : index
    %c0_110 = arith.constant 0 : index
    %c0_111 = arith.constant 0 : index
    %358 = vector.load %arg13[%c1_109, %c0_110, %c0_111] : memref<2x32x64xf32, #tpu.memory_space<vmem>>, vector<1x32x64xf32>
    %359 = vector.shape_cast %358 : vector<1x32x64xf32> to vector<32x64xf32>
    %cst_112 = arith.constant dense<0.000000e+00> : vector<16x64xf32>
    %360 = tpu.matmul %357, %359, %cst_112 {dimension_numbers = #tpu.dot_dimension_numbers<[1], [0], [0], [1], [0, 0, 1, 1], [], []>} : vector<16x32xf32>, vector<32x64xf32>, vector<16x64xf32> -> vector<16x64xf32>
    %c1_113 = arith.constant 1 : index
    %c0_114 = arith.constant 0 : index
    %c0_115 = arith.constant 0 : index
    %361 = vector.load %arg14[%c1_113, %c0_114, %c0_115] : memref<2x1x64xf32, #tpu.memory_space<vmem>>, vector<1x1x64xf32>
    %362 = vector.shape_cast %361 : vector<1x1x64xf32> to vector<1x64xf32>
    %363 = vector.broadcast %362 : vector<1x64xf32> to vector<16x64xf32>
    %364 = arith.addf %360, %363 : vector<16x64xf32>
    %cst_116 = arith.constant 5.000000e-01 : f32
    %365 = vector.broadcast %cst_116 : f32 to vector<16x64xf32>
    %366 = arith.mulf %365, %364 : vector<16x64xf32>
    %cst_117 = arith.constant 4.471500e-02 : f32
    %367 = vector.broadcast %cst_117 : f32 to vector<16x64xf32>
    %368 = arith.mulf %367, %364 : vector<16x64xf32>
    %369 = arith.mulf %368, %364 : vector<16x64xf32>
    %370 = arith.mulf %369, %364 : vector<16x64xf32>
    %371 = arith.addf %364, %370 : vector<16x64xf32>
    %cst_118 = arith.constant 0.797884583 : f32
    %372 = vector.broadcast %cst_118 : f32 to vector<16x64xf32>
    %373 = arith.mulf %372, %371 : vector<16x64xf32>
    %374 = math.tanh %373 : vector<16x64xf32>
    %cst_119 = arith.constant 1.000000e+00 : f32
    %375 = vector.broadcast %cst_119 : f32 to vector<16x64xf32>
    %376 = arith.addf %375, %374 : vector<16x64xf32>
    %377 = arith.mulf %366, %376 : vector<16x64xf32>
    %c1_120 = arith.constant 1 : index
    %c0_121 = arith.constant 0 : index
    %c0_122 = arith.constant 0 : index
    %378 = vector.load %arg15[%c1_120, %c0_121, %c0_122] : memref<2x64x32xf32, #tpu.memory_space<vmem>>, vector<1x64x32xf32>
    %379 = vector.shape_cast %378 : vector<1x64x32xf32> to vector<64x32xf32>
    %cst_123 = arith.constant dense<0.000000e+00> : vector<16x32xf32>
    %380 = tpu.matmul %377, %379, %cst_123 {dimension_numbers = #tpu.dot_dimension_numbers<[1], [0], [0], [1], [0, 0, 1, 1], [], []>} : vector<16x64xf32>, vector<64x32xf32>, vector<16x32xf32> -> vector<16x32xf32>
    %c1_124 = arith.constant 1 : index
    %c0_125 = arith.constant 0 : index
    %c0_126 = arith.constant 0 : index
    %381 = vector.load %arg16[%c1_124, %c0_125, %c0_126] : memref<2x1x32xf32, #tpu.memory_space<vmem>>, vector<1x1x32xf32>
    %382 = vector.shape_cast %381 : vector<1x1x32xf32> to vector<1x32xf32>
    %383 = vector.broadcast %382 : vector<1x32xf32> to vector<16x32xf32>
    %384 = arith.addf %380, %383 : vector<16x32xf32>
    %385 = arith.addf %384, %357 : vector<16x32xf32>
    %c1_127 = arith.constant 1 : index
    %c0_128 = arith.constant 0 : index
    %c0_129 = arith.constant 0 : index
    %386 = vector.load %arg17[%c1_127, %c0_128, %c0_129] : memref<2x1x32xf32, #tpu.memory_space<vmem>>, vector<1x1x32xf32>
    %387 = vector.shape_cast %386 : vector<1x1x32xf32> to vector<1x32xf32>
    %c1_130 = arith.constant 1 : index
    %c0_131 = arith.constant 0 : index
    %c0_132 = arith.constant 0 : index
    %388 = vector.load %arg18[%c1_130, %c0_131, %c0_132] : memref<2x1x32xf32, #tpu.memory_space<vmem>>, vector<1x1x32xf32>
    %389 = vector.shape_cast %388 : vector<1x1x32xf32> to vector<1x32xf32>
    %cst_133 = arith.constant dense<0.000000e+00> : vector<16xf32>
    %390 = vector.multi_reduction <add>, %385, %cst_133 [1] : vector<16x32xf32> to vector<16xf32>
    %391 = vector.shape_cast %390 : vector<16xf32> to vector<16x1xf32>
    %cst_134 = arith.constant 3.200000e+01 : f32
    %392 = vector.broadcast %cst_134 : f32 to vector<16x1xf32>
    %393 = arith.divf %391, %392 : vector<16x1xf32>
    %394 = vector.broadcast %393 : vector<16x1xf32> to vector<16x32xf32>
    %395 = arith.subf %385, %394 : vector<16x32xf32>
    %396 = arith.mulf %395, %395 : vector<16x32xf32>
    %cst_135 = arith.constant dense<0.000000e+00> : vector<16xf32>
    %397 = vector.multi_reduction <add>, %396, %cst_135 [1] : vector<16x32xf32> to vector<16xf32>
    %398 = vector.shape_cast %397 : vector<16xf32> to vector<16x1xf32>
    %cst_136 = arith.constant 3.200000e+01 : f32
    %399 = vector.broadcast %cst_136 : f32 to vector<16x1xf32>
    %400 = arith.divf %398, %399 : vector<16x1xf32>
    %401 = vector.broadcast %393 : vector<16x1xf32> to vector<16x32xf32>
    %402 = arith.subf %385, %401 : vector<16x32xf32>
    %cst_137 = arith.constant 9.99999996E-13 : f32
    %403 = vector.broadcast %cst_137 : f32 to vector<16x1xf32>
    %404 = arith.addf %400, %403 : vector<16x1xf32>
    %405 = math.rsqrt %404 : vector<16x1xf32>
    %406 = vector.broadcast %405 : vector<16x1xf32> to vector<16x32xf32>
    %407 = arith.mulf %402, %406 : vector<16x32xf32>
    %408 = vector.broadcast %387 : vector<1x32xf32> to vector<16x32xf32>
    %409 = arith.mulf %407, %408 : vector<16x32xf32>
    %410 = vector.broadcast %389 : vector<1x32xf32> to vector<16x32xf32>
    %411 = arith.addf %409, %410 : vector<16x32xf32>
    %c0_138 = arith.constant 0 : index
    %c0_139 = arith.constant 0 : index
    %412 = vector.load %arg19[%c0_138, %c0_139] : memref<1x32xf32, #tpu.memory_space<vmem>>, vector<1x32xf32>
    %413 = vector.extract_strided_slice %411 {offsets = [0, 0], sizes = [8, 32], strides = [1, 1]} : vector<16x32xf32> to vector<8x32xf32>
    %cst_140 = arith.constant dense<0.000000e+00> : vector<1x8xf32>
    %414 = tpu.matmul %412, %413, %cst_140 {dimension_numbers = #tpu.dot_dimension_numbers<[1], [1], [0], [0], [0, 0, 1, 0], [], []>} : vector<1x32xf32>, vector<8x32xf32>, vector<1x8xf32> -> vector<1x8xf32>
    %c0_141 = arith.constant 0 : index
    %c0_142 = arith.constant 0 : index
    %415 = vector.load %arg20[%c0_141, %c0_142] : memref<1x1xf32, #tpu.memory_space<vmem>>, vector<1x1xf32>
    %416 = vector.broadcast %415 : vector<1x1xf32> to vector<1x8xf32>
    %417 = arith.addf %414, %416 : vector<1x8xf32>
    %c0_143 = arith.constant 0 : index
    %c0_144 = arith.constant 0 : index
    %418 = vector.load %arg19[%c0_143, %c0_144] : memref<1x32xf32, #tpu.memory_space<vmem>>, vector<1x32xf32>
    %419 = vector.extract_strided_slice %411 {offsets = [8, 0], sizes = [8, 32], strides = [1, 1]} : vector<16x32xf32> to vector<8x32xf32>
    %cst_145 = arith.constant dense<0.000000e+00> : vector<1x8xf32>
    %420 = tpu.matmul %418, %419, %cst_145 {dimension_numbers = #tpu.dot_dimension_numbers<[1], [1], [0], [0], [0, 0, 1, 0], [], []>} : vector<1x32xf32>, vector<8x32xf32>, vector<1x8xf32> -> vector<1x8xf32>
    %c0_146 = arith.constant 0 : index
    %c0_147 = arith.constant 0 : index
    %421 = vector.load %arg20[%c0_146, %c0_147] : memref<1x1xf32, #tpu.memory_space<vmem>>, vector<1x1xf32>
    %422 = vector.broadcast %421 : vector<1x1xf32> to vector<1x8xf32>
    %423 = arith.addf %420, %422 : vector<1x8xf32>
    %424 = tpu.concatenate %417, %423 in 0 : vector<1x8xf32>, vector<1x8xf32> -> vector<2x8xf32>
    %c0_148 = arith.constant 0 : index
    %c0_149 = arith.constant 0 : index
    %425 = vector.load %arg21[%c0_148, %c0_149] : memref<2x8xf32, #tpu.memory_space<vmem>>, vector<2x8xf32>
    tpu.vector_store %arg21[%c0_148, %c0_149], %424 {strides = array<i32>} : memref<2x8xf32, #tpu.memory_space<vmem>>, vector<2x8xf32>,
    return
  }
}

</mosaic_0001>

<bundles_post_ra>
// kernel: tpu_custom_call.1
= control target key start
LH: loop header
LB: loop body
LE: loop exit
PB: predicated region body
PF: predicated region fallthrough
CT: control target
= control target key end

     0   :  { %s5884_s0 = inlined_call_operand.hbm [shape: f32[2,8,16], index: 0, kind: input, shape index: {}]   ;;  %s5885_s1 = inlined_call_operand.vmem [shape: f32[2,8], index: 1, kind: input, shape index: {}]   ;;  %s5886_s2 = inlined_call_operand.hbm [shape: f32[16,32], index: 2, kind: input, shape index: {}]   ;;  %s5887_s3 = inlined_call_operand.hbm [shape: f32[1,32], index: 3, kind: input, shape index: {}]   ;;  %s5888_s4 = inlined_call_operand.vmem [shape: f32[8,32], index: 4, kind: input, shape index: {}]   ;;  %s5889_s5 = inlined_call_operand.hbm [shape: f32[1,32], index: 5, kind: input, shape index: {}]   ;;  %s5890_s6 = inlined_call_operand.hbm [shape: f32[1,32], index: 6, kind: input, shape index: {}]   ;;  %s5891_s7 = inlined_call_operand.vmem [shape: f32[2,32,96], index: 7, kind: input, shape index: {}]   ;;  %s5892_s8 = inlined_call_operand.vmem [shape: f32[2,1,96], index: 8, kind: input, shape index: {}]   ;;  %s5893_s9 = inlined_call_operand.vmem [shape: f32[2,32,32], index: 9, kind: input, shape index: {}]   ;;  %s5894_s10 = inlined_call_operand.vmem [shape: f32[2,1,32], index: 10, kind: input, shape index: {}]   ;;  %s5895_s11 = inlined_call_operand.vmem [shape: f32[2,1,32], index: 11, kind: input, shape index: {}]   ;;  %s5896_s12 = inlined_call_operand.vmem [shape: f32[2,1,32], index: 12, kind: input, shape index: {}]   ;;  %s5897_s13 = inlined_call_operand.vmem [shape: f32[2,32,64], index: 13, kind: input, shape index: {}]   ;;  %s5898_s14 = inlined_call_operand.vmem [shape: f32[2,1,64], index: 14, kind: input, shape index: {}]   ;;  %s5899_s15 = inlined_call_operand.vmem [shape: f32[2,64,32], index: 15, kind: input, shape index: {}]   ;;  %s5900_s16 = inlined_call_operand.vmem [shape: f32[2,1,32], index: 16, kind: input, shape index: {}]   ;;  %s5901_s17 = inlined_call_operand.vmem [shape: f32[2,1,32], index: 17, kind: input, shape index: {}]   ;;  %s5902_s18 = inlined_call_operand.vmem [shape: f32[2,1,32], index: 18, kind: input, shape index: {}]   ;;  %s5903_s19 = inlined_call_operand.vmem [shape: f32[1,32], index: 19, kind: input, shape index: {}]   ;;  %s5904_s20 = inlined_call_operand.<no memory space> [shape: f32[1,1], index: 20, kind: input, shape index: {}]   ;;  %s5905_s21 = inlined_call_operand.hbm [shape: f32[2,8], index: 21, kind: output, shape index: {}]  }
   0x1   :  { %5914 = sst [smem:[#allocation17_spill]] %s5884_s0  ;;  %v26_v0 = vstv %s5904_s20 }
   0x2   :  { %5915 = sst [smem:[#allocation18_spill]] %s5885_s1  ;;  %27 = vst [vmem:[#allocation2] sm:$0x1] %v26_v0 }
   0x3   :  { %5916 = sst [smem:[#allocation19_spill]] %s5886_s2 }
   0x4   :  { %5917 = sst [smem:[#allocation20_spill]] %s5887_s3 }
   0x5   :  { %5918 = sst [smem:[#allocation21_spill]] %s5888_s4 }
   0x6   :  { %5919 = sst [smem:[#allocation22_spill]] %s5889_s5 }
   0x7   :  { %5920 = sst [smem:[#allocation23_spill]] %s5905_s21 }
   0x8   :  { %28 = vsyncpa [#allocation4], 0 }
   0x9   :  { %29 = vsyncpa [#allocation7], 0 }
   0xa   :  { %30 = vsyncpa [#allocation10], 0 }
   0xb   :  { %31 = vsyncpa [#allocation5], 0  ;;  %s5041_s26 = smov [#allocation6]   ;;  %s5042_s3 = smov [#allocation9]  }
   0xc   :  { %s51_s27 = sshll.u32 %s5041_s26, 4  ;;  %s76_s28 = sshll.u32 %s5042_s3, 4  ;;  %s52_s27 = int_to_ptr.vmem [resolvable:$true] %s51_s27  ;;  %s5172_s28 = int_to_ptr.vmem [resolvable:$true] %s76_s28 }
   0xd   :  { %s5921_s4 = sld [smem:[#allocation19_spill]] }
  0x13   :  { %s4901_s30 = scalar_lea.hbm %s5921_s4, 256 }
  0x14   :  { %p4902_p0 = scmp.ne.s32.totalorder %s5921_s4, %s4901_s30  ;;  %p4905_p1 = scmp.lt.u32.totalorder %s4901_s30, %s5921_s4 }
  0x16   :  { %p4907_p2 = pnand %p4905_p1, %p4902_p0 }
  0x18   :  { %4910 = shalt.err (!%p4907_p2)
}
  0x19   :  { %s4911_s1 = scalar_lea.vmem %s52_s27, 256  ;;  %p4916_p4 = scmp.lt.s32.totalorder %s52_s27, %s52_s27 }
  0x1a   :  { %p4912_p3 = scmp.ne.s32.totalorder %s52_s27, %s4911_s1  ;;  %p4917_p5 = scmp.lt.s32.totalorder %s4911_s1, %s4911_s1 }
  0x1c   :  { %p4918_p6 = por %p4917_p5, %p4916_p4 }
  0x1e   :  { %p4919_p7 = pnand %p4918_p6, %p4912_p3 }
  0x20   :  { %4922 = shalt.err (!%p4919_p7)
}
  0x21   :  { %s5910_s24 = smov 128   ;;  %s5911_s2 = smov 8  }
  0x22   :  { %57 = dma.hbm_to_vmem [thread:$0]  %s5921_s4, 256, %s52_s27, [#allocation7], %s5910_s24, %s5910_s24, %s5911_s2  }
  0x23   :  { %s5922_s0 = sld [smem:[#allocation22_spill]] }
  0x29   :  { %s4923_s30 = scalar_lea.hbm %s5922_s0, 16 }
  0x2a   :  { %p4924_p8 = scmp.ne.s32.totalorder %s5922_s0, %s4923_s30  ;;  %p4927_p9 = scmp.lt.u32.totalorder %s4923_s30, %s5922_s0 }
  0x2c   :  { %p4929_p10 = pnand %p4927_p9, %p4924_p8 }
  0x2e   :  { %4932 = shalt.err (!%p4929_p10)
}
  0x2f   :  { %s4933_s1 = scalar_lea.vmem %s5172_s28, 16  ;;  %s4937_s27 = scalar_lea.vmem %s5172_s28, 32 }
  0x30   :  { %p4934_p11 = scmp.ne.s32.totalorder %s5172_s28, %s4933_s1  ;;  %p4938_p12 = scmp.lt.s32.totalorder %s5172_s28, %s5172_s28 }
  0x31   :  { %p4939_p13 = scmp.lt.s32.totalorder %s4937_s27, %s4933_s1 }
  0x33   :  { %p4940_p0 = por %p4939_p13, %p4938_p12 }
  0x35   :  { %p4941_p1 = pnand %p4940_p0, %p4934_p11 }
  0x37   :  { %4944 = shalt.err (!%p4941_p1)
}
  0x38   :  { %79 = dma.hbm_to_vmem [thread:$0]  %s5922_s0, 16, %s5172_s28, [#allocation10]  }
  0x39   :  { %s5045_s26 = smov [#allocation3]   ;;  %s5046_s29 = smov [#allocation8]  }
  0x3a   :  { %s37_s3 = sshll.u32 %s5045_s26, 4  ;;  %s64_s30 = sshll.u32 %s5046_s29, 4  ;;  %s38_s3 = int_to_ptr.vmem [resolvable:$true] %s37_s3  ;;  %s65_s30 = int_to_ptr.vmem [resolvable:$true] %s64_s30 }
  0x3b   :  { %s5923_s20 = sld [smem:[#allocation17_spill]] }
  0x41   :  { %s4945_s23 = scalar_lea.hbm %s5923_s20, 256 }
  0x42   :  { %p4946_p2 = scmp.ne.s32.totalorder %s5923_s20, %s4945_s23  ;;  %p4949_p3 = scmp.lt.u32.totalorder %s4945_s23, %s5923_s20 }
  0x44   :  { %p4951_p4 = pnand %p4949_p3, %p4946_p2 }
  0x46   :  { %4954 = shalt.err (!%p4951_p4)
}
  0x47   :  { %s4955_s28 = scalar_lea.vmem %s38_s3, 256  ;;  %p4960_p6 = scmp.lt.s32.totalorder %s38_s3, %s38_s3 }
  0x48   :  { %p4956_p5 = scmp.ne.s32.totalorder %s38_s3, %s4955_s28  ;;  %p4961_p7 = scmp.lt.s32.totalorder %s4955_s28, %s4955_s28 }
  0x4a   :  { %p4962_p8 = por %p4961_p7, %p4960_p6 }
  0x4c   :  { %p4963_p9 = pnand %p4962_p8, %p4956_p5 }
  0x4e   :  { %4966 = shalt.err (!%p4963_p9)
}
  0x4f   :  { %s5924_s0 = smov 8   ;;  %s5925_s4 = smov 128  }
  0x50   :  { %43 = dma.hbm_to_vmem [thread:$0]  %s5923_s20, 256, %s38_s3, [#allocation4], %s5925_s4, %s5925_s4, %s5924_s0  }
  0x51   :  { %s5926_s2 = sld [smem:[#allocation20_spill]] }
  0x57   :  { %s4967_s5 = scalar_lea.hbm %s5926_s2, 16 }
  0x58   :  { %p4968_p10 = scmp.ne.s32.totalorder %s5926_s2, %s4967_s5  ;;  %p4971_p11 = scmp.lt.u32.totalorder %s4967_s5, %s5926_s2 }
  0x5a   :  { %p4973_p12 = pnand %p4971_p11, %p4968_p10 }
  0x5c   :  { %4976 = shalt.err (!%p4973_p12)
}
  0x5d   :  { %s4977_s28 = scalar_lea.vmem %s65_s30, 16  ;;  %s4981_s21 = scalar_lea.vmem %s65_s30, 32 }
  0x5e   :  { %p4978_p13 = scmp.ne.s32.totalorder %s65_s30, %s4977_s28  ;;  %p4982_p0 = scmp.lt.s32.totalorder %s65_s30, %s65_s30 }
  0x5f   :  { %p4983_p1 = scmp.lt.s32.totalorder %s4981_s21, %s4977_s28 }
  0x61   :  { %p4984_p2 = por %p4983_p1, %p4982_p0 }
  0x63   :  { %p4985_p3 = pnand %p4984_p2, %p4978_p13 }
  0x65   :  { %4988 = shalt.err (!%p4985_p3)
}
  0x66   :  { %67 = dma.hbm_to_vmem [thread:$0]  %s5926_s2, 16, %s65_s30, [#allocation7]  }
  0x67   :  { %s5047_s4 = smov [#allocation11]   ;;  %s4989_s29 = scalar_lea.hbm %s5890_s6, 16 }
  0x68   :  { %s86_s25 = sshll.u32 %s5047_s4, 4  ;;  %p4990_p4 = scmp.ne.s32.totalorder %s5890_s6, %s4989_s29  ;;  %s87_s25 = int_to_ptr.vmem [resolvable:$true] %s86_s25 }
  0x69   :  { %p4993_p5 = scmp.lt.u32.totalorder %s4989_s29, %s5890_s6 }
  0x6b   :  { %p4995_p6 = pnand %p4993_p5, %p4990_p4 }
  0x6d   :  { %4998 = shalt.err (!%p4995_p6)
}
  0x6e   :  { %s4999_s1 = scalar_lea.vmem %s87_s25, 16  ;;  %s5003_s30 = scalar_lea.vmem %s87_s25, 32 }
  0x6f   :  { %p5000_p7 = scmp.ne.s32.totalorder %s87_s25, %s4999_s1  ;;  %p5004_p8 = scmp.lt.s32.totalorder %s87_s25, %s87_s25 }
  0x70   :  { %p5005_p9 = scmp.lt.s32.totalorder %s5003_s30, %s4999_s1 }
  0x72   :  { %p5006_p10 = por %p5005_p9, %p5004_p8 }
  0x74   :  { %p5007_p11 = pnand %p5006_p10, %p5000_p7 }
  0x76   :  { %5010 = shalt.err (!%p5007_p11)
}
  0x77   :  { %89 = dma.hbm_to_vmem [thread:$0]  %s5890_s6, 16, %s87_s25, [#allocation10]  }
  0x78   :  { %5033 = dma.done.wait [#allocation4], 256  }
  0x79   :  { %5034 = vsyncadd [#allocation4], 4294967040 }
  0x7a   :  { %5035 = dma.done.wait [#allocation7], 272  }
  0x7b   :  { %5036 = vsyncadd [#allocation7], 4294967024 }
  0x7c   :  { %5037 = dma.done.wait [#allocation10], 32  }
  0x7d   :  { %5038 = vsyncadd [#allocation10], 4294967264  ;;  %vm145_vm0 = vcmask 130048   ;;  %v135_v1 = vld [vmem:[#allocation6] sm:$0xff]  ;;  %v136_v2 = vld [vmem:[#allocation6 + $0x8] sm:$0xff]  ;;  %s5927_s3 = sld [smem:[#allocation21_spill]] }
  0x7e   :  { %v133_v3 = vld [vmem:[#allocation3] sm:$0xff]  ;;  %v4706_v4 = vpack.c.bf16 %v136_v2, %v135_v1  ;;  %v134_v5 = vld [vmem:[#allocation3 + $0x8] sm:$0xff]  ;;  %vm231_vm1 = vcmask 261120   ;;  %v284_v30 = vld [vmem:[%s5891_s7 + $0x18] sm:$0xff]  ;;  %v5048_v48 = vmov 0.0   ;;  %vm5049_vm2 = vmmov 0  }
  0x7f   :  { %4429 = vmatprep.mubr.msk.f32.mxu0 %vm145_vm0, %v133_v3  ;;  %v4180_v6 = vld [vmem:[#allocation8] ss:$0 sm:$0xff]  ;;  %v282_v27 = vld [vmem:[%s5891_s7 + $0x8] sm:$0xff]  ;;  %v283_v28 = vld [vmem:[%s5891_s7 + $0x10] sm:$0xff]  ;;  %s5050_s1 = smov 112   ;;  %s5051_s30 = smov 120  }
  0x80   :  { %4707 = vmatprep.subr.bf16.mxu0 %v4706_v4  ;;  %v281_v26 = vld [vmem:[%s5891_s7] sm:$0xff]  ;;  %v4714_v31 = vpack.c.bf16 %v284_v30, %v283_v28  ;;  %s5052_s2 = smov 104   ;;  %s5053_s27 = smov 96   ;;  %vm389_vm3 = vcmask 64512   ;;  %vm1730_vm4 = vcmask 195584   ;;  %vm2010_vm5 = vcmask 523264  }
  0x81   :  { %4709 = vmatpush3.bf16.msra.mxu0 %v4706_v4  ;;  %v4710_v29 = vpack.c.bf16 %v282_v27, %v281_v26  ;;  %v4183_v39 = vld [vmem:[#allocation9] ss:$0 sm:$0xff]  ;;  %v4184_v41 = vld [vmem:[#allocation11] ss:$0 sm:$0xff]  ;;  %v4185_v49 = vld [vmem:[%s5892_s8] ss:$0 sm:$0xff]  ;;  %v1004_v4 = vlaneseq }
  0x82   :  { %4443 = vmatprep.subr.mxu0 %v5048_v48  ;;  %s5054_s20 = smov 64   ;;  %s5055_s21 = smov 16   ;;  %vm4159_vm6 = vcmask 1040384   ;;  %vm4161_vm7 = vcmask 58368  }
  0x83   :  { %v137_v9 = vld [vmem:[%s5927_s3] sm:$0xff]  ;;  %4711 = vmatprep.subr.bf16.mxu1 %v4710_v29  ;;  %s5928_s3 = sld [smem:[#allocation18_spill]]  ;;  %s5056_s6 = smov 24  }
  0x84   :  { %4430 = vmatmul.mubr.msk.f32.vlgmr.msra.gmra.mrb[0].mxu0 %vm145_vm0, %v134_v5  ;;  %4713 = vmatpush3.bf16.msra.mxu1 %v4710_v29 }
  0x85   :  { %4715 = vmatprep.subr.bf16.mxu1 %v4714_v31  ;;  %4445 = vmatprep.mubr.msk.f32.mxu0 %vm5049_vm2, %v5048_v48 }
  0x88   :  { %4717 = vmatpush3.bf16.msra.mxu1 %v4714_v31 }
  0x89   :  { %4453 = vmatprep.subr.mxu1 %v5048_v48  ;;  %v275_v5 = vld [vmem:[%s5928_s3] sm:$0x3] }
 0x157   :  { %v4431_v7 = vpop.f32.mrb[0].mxu0 }
 0x158   :  { %v218_v8 = vpop.f32.mrb[1].mxu0  ;;  %v224_v10 = vadd.f32 %v4431_v7, %v4180_v6  ;;  %v1005_v7 = vshrl.u32 %v1004_v4, 7 }
 0x159   :  { %v219_v11 = vadd.f32 %v4180_v6, %v218_v8  ;;  %v276_v6 = vsub.f32 1.0, %v275_v5 }
 0x15a   :  { %v228_v14 = vadd.f32 %v224_v10, %v137_v9 }
 0x15b   :  { %v227_v12 = vadd.f32 %v219_v11, %v137_v9  ;;  %v277_v8 = vmul.f32 -10000.0, %v276_v6  ;;  %v5379_v9 = vsub.s32 0, %v1005_v7 }
 0x15c   :  { %v235_v15 = vsel %vm231_vm1, %v228_v14, 0.0 }
 0x15d   :  { %v232_v13 = vsel %vm231_vm1, %v227_v12, 0.0  ;;  %v5382_v10 = vrot.slane %v277_v8, %v5379_v9 }
 0x15e   :  { %233 = vadd.xlane.f32.xlu0 %v232_v13 }
 0x162   :  { %236 = vadd.xlane.f32.xlu0 %v235_v15 }
 0x1eb   :  { %v234_v16 = vpop.xlane.xlu0 %233 }
 0x1ec   :  { %v239_v17 = vmul.f32 0.03125, %v234_v16 }
 0x1ee   :  { %v241_v18 = vsub.f32 %v227_v12, %v239_v17 }
 0x1ef   :  { %v237_v19 = vpop.xlane.xlu0 %236 }
 0x1f0   :  { %v240_v20 = vmul.f32 0.03125, %v237_v19  ;;  %v243_v21 = vmul.f32 %v241_v18, %v241_v18 }
 0x1f2   :  { %v242_v22 = vsub.f32 %v228_v14, %v240_v20  ;;  %v245_v23 = vsel %vm231_vm1, %v243_v21, 0.0 }
 0x1f3   :  { %246 = vadd.xlane.f32.xlu1 %v245_v23 }
 0x1f4   :  { %v244_v24 = vmul.f32 %v242_v22, %v242_v22 }
 0x1f6   :  { %v248_v25 = vsel %vm231_vm1, %v244_v24, 0.0 }
 0x1f7   :  { %249 = vadd.xlane.f32.xlu1 %v248_v25 }
 0x280   :  { %v247_v32 = vpop.xlane.xlu1 %246 }
 0x281   :  { %v251_v33 = vmul.f32 0.03125, %v247_v32 }
 0x283   :  { %v253_v34 = vadd.f32 1e-12, %v251_v33 }
 0x284   :  { %v250_v35 = vpop.xlane.xlu1 %249 }
 0x285   :  { %4809 = vrsqrt.f32 %v253_v34  ;;  %v252_v36 = vmul.f32 0.03125, %v250_v35 }
 0x287   :  { %v254_v37 = vadd.f32 1e-12, %v252_v36 }
 0x289   :  { %4811 = vrsqrt.f32 %v254_v37 }
 0x28f   :  { %v4810_v38 = vpop.eup %4809 }
 0x290   :  { %v257_v40 = vmul.f32 %v4810_v38, %v241_v18 }
 0x292   :  { %v265_v42 = vmul.f32 %v4183_v39, %v257_v40 }
 0x293   :  { %v4812_v43 = vpop.eup %4811 }
 0x294   :  { %v258_v44 = vmul.f32 %v4812_v43, %v242_v22  ;;  %v5267_v45 = vadd.f32 %v4184_v41, %v265_v42  ;;  %v279_v22 = vrot.slane %v277_v8, 1 }
 0x296   :  { %v266_v46 = vmul.f32 %v4183_v39, %v258_v44  ;;  %4440 = vmatprep.mubr.msk.f32.mxu1 %vm231_vm1, %v5267_v45  ;;  %v5391_v33 = vrot.slane %v279_v22, %v5379_v9 }
 0x298   :  { %v5271_v47 = vadd.f32 %v4184_v41, %v266_v46 }
 0x29a   :  { %4441 = vmatmul.mubr.msk.f32.vlgmr.msra.gmra.mrb[0].mxu1 %vm231_vm1, %v5271_v47 }
 0x29b   :  { %4455 = vmatprep.mubr.msk.f32.mxu1 %vm5049_vm2, %v5048_v48 }
 0x36d   :  { %v4442_v50 = vpop.f32.mrb[0].mxu1 }
 0x36e   :  { %v364_v51 = vpop.f32.mrb[1].mxu1  ;;  %v5290_v53 = vadd.f32 %v4442_v50, %v4185_v49 }
 0x36f   :  { %v5284_v52 = vadd.f32 %v4185_v49, %v364_v51 }
 0x371   :  { %376 = vrot.lane.b32.xlu1 %v5284_v52, %s5050_s1  ;;  %374 = vrot.lane.b32.xlu0 %v5284_v52, %s5051_s30 }
 0x375   :  { %378 = vrot.lane.b32.xlu1 %v5284_v52, %s5052_s2  ;;  %383 = vrot.lane.b32.xlu0 %v5290_v53, %s5050_s1 }
 0x379   :  { %381 = vrot.lane.b32.xlu1 %v5290_v53, %s5051_s30  ;;  %387 = vrot.lane.b32.xlu0 %v5284_v52, %s5053_s27 }
 0x37d   :  { %385 = vrot.lane.b32.xlu1 %v5290_v53, %s5052_s2 }
 0x3e3   :  { %v5302_v54 = vpop.permute.xlu1 %376  ;;  %v5304_v55 = vpop.permute.xlu0 %374 }
 0x3e4   :  { %540 = vrot.lane.b32.xlu0 %v5302_v54, %s5053_s27  ;;  %464 = vrot.lane.b32.xlu1 %v5304_v55, %s5053_s27 }
 0x3e7   :  { %v5310_v56 = vpop.permute.xlu1 %378  ;;  %v5312_v57 = vpop.permute.xlu0 %383 }
 0x3e8   :  { %692 = vrot.lane.b32.xlu0 %v5290_v53, %s5053_s27  ;;  %616 = vrot.lane.b32.xlu1 %v5310_v56, %s5053_s27 }
 0x3eb   :  { %v5318_v58 = vpop.permute.xlu1 %381  ;;  %v388_v59 = vpop.permute.xlu0 %387 }
 0x3ec   :  { %768 = vrot.lane.b32.xlu1 %v5318_v58, %s5053_s27  ;;  %844 = vrot.lane.b32.xlu0 %v5312_v57, %s5053_s27 }
 0x3ed   :  { %4444 = vmatpush3.xpose.msk.msra.mxu0 %vm389_vm3, %v388_v59 }
 0x3ee   :  { %4448 = vmatprep.subr.mxu0 %v5048_v48 }
 0x3ef   :  { %v5326_v60 = vpop.permute.xlu1 %385 }
 0x3f0   :  { %4446 = vmatmul.mubr.msk.f32.vlgmr.msra.gmra.mrb[2].mxu0 %vm389_vm3, %v5284_v52  ;;  %920 = vrot.lane.b32.xlu1 %v5326_v60, %s5053_s27 }
 0x3f1   :  { %4450 = vmatprep.mubr.msk.f32.mxu0 %vm5049_vm2, %v5048_v48 }
 0x456   :  { %v465_v61 = vpop.permute.xlu1 %464  ;;  %v541_v62 = vpop.permute.xlu0 %540 }
 0x457   :  { %4449 = vmatpush3.xpose.msk.msra.mxu0 %vm389_vm3, %v465_v61  ;;  %4454 = vmatpush3.xpose.msk.msra.mxu1 %vm389_vm3, %v541_v62 }
 0x458   :  { %4458 = vmatprep.subr.mxu0 %v5048_v48  ;;  %4463 = vmatprep.subr.mxu1 %v5048_v48 }
 0x45a   :  { %v617_v63 = vpop.permute.xlu1 %616  ;;  %4451 = vmatmul.mubr.msk.f32.vlgmr.msra.gmra.mrb[4].mxu0 %vm389_vm3, %v5304_v55  ;;  %4456 = vmatmul.mubr.msk.f32.vlgmr.msra.gmra.mrb[2].mxu1 %vm389_vm3, %v5302_v54  ;;  %v693_v0 = vpop.permute.xlu0 %692 }
 0x45b   :  { %4459 = vmatpush3.xpose.msk.msra.mxu0 %vm389_vm3, %v617_v63  ;;  %4464 = vmatpush3.xpose.msk.msra.mxu1 %vm389_vm3, %v693_v0 }
 0x45c   :  { %4460 = vmatprep.mubr.msk.f32.mxu0 %vm5049_vm2, %v5048_v48  ;;  %4465 = vmatprep.mubr.msk.f32.mxu1 %vm5049_vm2, %v5048_v48 }
 0x45d   :  { %4468 = vmatprep.subr.mxu0 %v5048_v48  ;;  %4473 = vmatprep.subr.mxu1 %v5048_v48 }
 0x45e   :  { %v769_v1 = vpop.permute.xlu1 %768  ;;  %4461 = vmatmul.mubr.msk.f32.vlgmr.msra.gmra.mrb[6].mxu0 %vm389_vm3, %v5310_v56  ;;  %4466 = vmatmul.mubr.msk.f32.vlgmr.msra.gmra.mrb[4].mxu1 %vm389_vm3, %v5290_v53  ;;  %v845_v2 = vpop.permute.xlu0 %844 }
 0x45f   :  { %4469 = vmatpush3.xpose.msk.msra.mxu0 %vm389_vm3, %v769_v1  ;;  %4474 = vmatpush3.xpose.msk.msra.mxu1 %vm389_vm3, %v845_v2 }
 0x460   :  { %4470 = vmatprep.mubr.msk.f32.mxu0 %vm5049_vm2, %v5048_v48  ;;  %4475 = vmatprep.mubr.msk.f32.mxu1 %vm5049_vm2, %v5048_v48 }
 0x461   :  { %4478 = vmatprep.subr.mxu0 %v5048_v48  ;;  %4483 = vmatprep.subr.mxu1 %v5048_v48 }
 0x462   :  { %v921_v3 = vpop.permute.xlu1 %920  ;;  %4471 = vmatmul.mubr.msk.f32.vlgmr.msra.gmra.mrb[8].mxu0 %vm389_vm3, %v5318_v58  ;;  %4476 = vmatmul.mubr.msk.f32.vlgmr.msra.gmra.mrb[6].mxu1 %vm389_vm3, %v5312_v57 }
 0x463   :  { %4479 = vmatpush3.xpose.msk.msra.mxu0 %vm389_vm3, %v921_v3  ;;  %4480 = vmatprep.mubr.msk.f32.mxu0 %vm5049_vm2, %v5048_v48 }
 0x464   :  { %4488 = vmatprep.subr.mxu0 %v5048_v48  ;;  %4485 = vmatprep.mubr.msk.f32.mxu1 %vm5049_vm2, %v5048_v48 }
 0x466   :  { %4481 = vmatmul.mubr.msk.f32.vlgmr.msra.gmra.mrb[10].mxu0 %vm389_vm3, %v5326_v60 }
 0x467   :  { %4490 = vmatprep.mubr.msk.f32.mxu0 %vm5049_vm2, %v5048_v48 }
 0x4c3   :  { %v460_v11 = vpop.f32.mrb[2].mxu0 }
 0x4c4   :  { %v996_v12 = vmul.f32 0.35355338, %v460_v11  ;;  %v4447_v13 = vpop.f32.mrb[3].mxu0 }
 0x4c6   :  { %v1012_v14 = vadd.f32 %v5382_v10, %v996_v12 }
 0x4c8   :  { %v1020_v15 = vsel %vm389_vm3, %v1012_v14, -inf }
 0x4c9   :  { %1021 = vmax.xlane.f32.xlu0 %v1020_v15 }
 0x52d   :  { %v536_v16 = vpop.f32.mrb[4].mxu0  ;;  %v612_v17 = vpop.f32.mrb[2].mxu1 }
 0x52e   :  { %v997_v18 = vmul.f32 0.35355338, %v536_v16  ;;  %v998_v19 = vmul.f32 0.35355338, %v612_v17  ;;  %v4452_v20 = vpop.f32.mrb[5].mxu0  ;;  %v4457_v21 = vpop.f32.mrb[3].mxu1 }
 0x530   :  { %v1013_v23 = vadd.f32 %v5382_v10, %v997_v18  ;;  %v1014_v24 = vadd.f32 %v5382_v10, %v998_v19 }
 0x531   :  { %v688_v25 = vpop.f32.mrb[6].mxu0  ;;  %v764_v26 = vpop.f32.mrb[4].mxu1 }
 0x532   :  { %v999_v27 = vmul.f32 0.35355338, %v688_v25  ;;  %v4462_v28 = vpop.f32.mrb[7].mxu0  ;;  %v4467_v29 = vpop.f32.mrb[5].mxu1  ;;  %v1000_v30 = vmul.f32 0.35355338, %v764_v26 }
 0x533   :  { %v1023_v31 = vsel %vm389_vm3, %v1013_v23, -inf  ;;  %v1026_v32 = vsel %vm389_vm3, %v1014_v24, -inf }
 0x534   :  { %1024 = vmax.xlane.f32.xlu1 %v1023_v31  ;;  %1027 = vmax.xlane.f32.xlu0 %v1026_v32  ;;  %v1015_v34 = vadd.f32 %v5382_v10, %v999_v27  ;;  %v1016_v42 = vadd.f32 %v5391_v33, %v1000_v30 }
 0x535   :  { %v840_v35 = vpop.f32.mrb[8].mxu0  ;;  %v916_v36 = vpop.f32.mrb[6].mxu1 }
 0x536   :  { %v1001_v37 = vmul.f32 0.35355338, %v840_v35  ;;  %v4472_v38 = vpop.f32.mrb[9].mxu0  ;;  %v4477_v39 = vpop.f32.mrb[7].mxu1  ;;  %v1002_v40 = vmul.f32 0.35355338, %v916_v36 }
 0x537   :  { %v1029_v41 = vsel %vm389_vm3, %v1015_v34, -inf  ;;  %v1032_v51 = vsel %vm389_vm3, %v1016_v42, -inf }
 0x538   :  { %1030 = vmax.xlane.f32.xlu0 %v1029_v41  ;;  %v1017_v43 = vadd.f32 %v5391_v33, %v1001_v37  ;;  %v1018_v59 = vadd.f32 %v5391_v33, %v1002_v40 }
 0x539   :  { %v992_v44 = vpop.f32.mrb[10].mxu0 }
 0x53a   :  { %v1003_v46 = vmul.f32 0.35355338, %v992_v44  ;;  %v4482_v49 = vpop.f32.mrb[11].mxu0  ;;  %v1035_v50 = vsel %vm389_vm3, %v1017_v43, -inf  ;;  %v1038_v63 = vsel %vm389_vm3, %v1018_v59, -inf }
 0x53b   :  { %1036 = vmax.xlane.f32.xlu1 %v1035_v50 }
 0x53c   :  { %1033 = vmax.xlane.f32.xlu0 %v1032_v51  ;;  %v1019_v61 = vadd.f32 %v5391_v33, %v1003_v46 }
 0x53e   :  { %v1041_v62 = vsel %vm389_vm3, %v1019_v61, -inf }
 0x53f   :  { %1042 = vmax.xlane.f32.xlu1 %v1041_v62 }
 0x540   :  { %1039 = vmax.xlane.f32.xlu0 %v1038_v63 }
 0x550   :  { %1184 = vrot.lane.b32.xlu1 %v5304_v55, %s5054_s20 }
 0x554   :  { %1260 = vrot.lane.b32.xlu1 %v5302_v54, %s5054_s20 }
 0x556   :  { %1108 = vrot.lane.b32.xlu0 %v5284_v52, %s5054_s20  ;;  %v1022_v0 = vpop.xlane.xlu0 %1021 }
 0x557   :  { %v1044_v1 = vsub.f32 %v1012_v14, %v1022_v0 }
 0x558   :  { %1336 = vrot.lane.b32.xlu1 %v5310_v56, %s5054_s20 }
 0x559   :  { %v1052_v2 = vmul.f32 1.442695, %v1044_v1 }
 0x55a   :  { %1412 = vrot.lane.b32.xlu0 %v5290_v53, %s5054_s20 }
 0x55b   :  { %4813 = vpow2.f32 %v1052_v2 }
 0x55c   :  { %1488 = vrot.lane.b32.xlu1 %v5318_v58, %s5054_s20 }
 0x565   :  { %v5415_v55 = vpop.eup %4813 }
 0x566   :  { %v1068_v54 = vsel %vm389_vm3, %v5415_v55, 0.0 }
 0x579   :  { %1069 = vadd.xlane.f32.xlu0 %v1068_v54 }
 0x5c1   :  { %v1025_v52 = vpop.xlane.xlu1 %1024  ;;  %v1028_v3 = vpop.xlane.xlu0 %1027 }
 0x5c2   :  { %v1045_v4 = vsub.f32 %v1013_v23, %v1025_v52  ;;  %v1046_v56 = vsub.f32 %v1014_v24, %v1028_v3 }
 0x5c4   :  { %v1054_v5 = vmul.f32 1.442695, %v1045_v4  ;;  %v1056_v6 = vmul.f32 1.442695, %v1046_v56 }
 0x5c5   :  { %v1031_v53 = vpop.xlane.xlu0 %1030 }
 0x5c6   :  { %4815 = vpow2.f32 %v1054_v5  ;;  %v1047_v7 = vsub.f32 %v1015_v34, %v1031_v53 }
 0x5c7   :  { %4817 = vpow2.f32 %v1056_v6 }
 0x5c8   :  { %v1058_v58 = vmul.f32 1.442695, %v1047_v7  ;;  %v1037_v8 = vpop.xlane.xlu1 %1036 }
 0x5c9   :  { %v1049_v11 = vsub.f32 %v1017_v43, %v1037_v8  ;;  %v1034_v12 = vpop.xlane.xlu0 %1033 }
 0x5ca   :  { %4819 = vpow2.f32 %v1058_v58  ;;  %v1048_v13 = vsub.f32 %v1016_v42, %v1034_v12  ;;  %v1747_v12 = vld [vmem:[%s5893_s9] sm:$0xff] }
 0x5cb   :  { %v1062_v14 = vmul.f32 1.442695, %v1049_v11 }
 0x5cc   :  { %v1060_v15 = vmul.f32 1.442695, %v1048_v13  ;;  %v1043_v16 = vpop.xlane.xlu1 %1042  ;;  %v1748_v13 = vld [vmem:[%s5893_s9 + $0x8] sm:$0xff] }
 0x5cd   :  { %4821 = vpow2.f32 %v1062_v14  ;;  %v1051_v17 = vsub.f32 %v1019_v61, %v1043_v16  ;;  %v1040_v18 = vpop.xlane.xlu0 %1039  ;;  %v4718_v14 = vpack.c.bf16 %v1748_v13, %v1747_v12  ;;  %v1750_v16 = vld [vmem:[%s5893_s9 + $0x18] sm:$0xff] }
 0x5ce   :  { %4823 = vpow2.f32 %v1060_v15  ;;  %v1050_v19 = vsub.f32 %v1018_v59, %v1040_v18  ;;  %v1749_v15 = vld [vmem:[%s5893_s9 + $0x10] sm:$0xff] }
 0x5cf   :  { %v1066_v20 = vmul.f32 1.442695, %v1051_v17  ;;  %v4722_v17 = vpack.c.bf16 %v1750_v16, %v1749_v15  ;;  %v4215_v16 = vld [vmem:[%s5895_s11] ss:$0 sm:$0xff] }
 0x5d0   :  { %v4816_v21 = vpop.eup %4815  ;;  %v1064_v22 = vmul.f32 1.442695, %v1050_v19  ;;  %v1185_v23 = vpop.permute.xlu1 %1184 }
 0x5d1   :  { %v4818_v24 = vpop.eup %4817  ;;  %4825 = vpow2.f32 %v1066_v20  ;;  %v1109_v25 = vpop.permute.xlu0 %1108  ;;  %v1071_v26 = vsel %vm389_vm3, %v4816_v21, 0.0  ;;  %4489 = vmatpush3.msra.mxu0 %v1185_v23 }
 0x5d2   :  { %4827 = vpow2.f32 %v1064_v22  ;;  %1072 = vadd.xlane.f32.xlu1 %v1071_v26  ;;  %v1074_v27 = vsel %vm389_vm3, %v4818_v24, 0.0  ;;  %4484 = vmatpush3.msra.mxu1 %v1109_v25 }
 0x5d3   :  { %1075 = vadd.xlane.f32.xlu0 %v1074_v27  ;;  %4493 = vmatprep.subr.mxu1 %v5048_v48 }
 0x5d4   :  { %v4820_v28 = vpop.eup %4819  ;;  %4498 = vmatprep.subr.mxu0 %v5048_v48  ;;  %v1261_v43 = vpop.permute.xlu1 %1260 }
 0x5d5   :  { %v1077_v29 = vsel %vm389_vm3, %v4820_v28, 0.0  ;;  %v1413_v39 = vpop.permute.xlu0 %1412 }
 0x5d6   :  { %1078 = vadd.xlane.f32.xlu1 %v1077_v29 }
 0x5d7   :  { %v4822_v30 = vpop.eup %4821 }
 0x5d8   :  { %v4824_v31 = vpop.eup %4823  ;;  %v1083_v32 = vsel %vm389_vm3, %v4822_v30, 0.0  ;;  %v1337_v44 = vpop.permute.xlu1 %1336 }
 0x5d9   :  { %v1080_v34 = vsel %vm389_vm3, %v4824_v31, 0.0 }
 0x5da   :  { %1084 = vadd.xlane.f32.xlu1 %v1083_v32  ;;  %1081 = vadd.xlane.f32.xlu0 %v1080_v34 }
 0x5db   :  { %v5426_v35 = vpop.eup %4825 }
 0x5dc   :  { %v5428_v36 = vpop.eup %4827  ;;  %v1089_v37 = vsel %vm389_vm3, %v5426_v35, 0.0 }
 0x5dd   :  { %v1086_v38 = vsel %vm389_vm3, %v5428_v36, 0.0 }
 0x5de   :  { %1090 = vadd.xlane.f32.xlu1 %v1089_v37  ;;  %1087 = vadd.xlane.f32.xlu0 %v1086_v38 }
 0x5ef   :  { %1640 = vrot.lane.b32.xlu1 %v5326_v60, %s5054_s20  ;;  %v1489_v60 = vpop.permute.xlu1 %1488 }
 0x5f4   :  { %1564 = vrot.lane.b32.xlu0 %v5312_v57, %s5054_s20 }
 0x606   :  { %v1070_v40 = vpop.xlane.xlu0 %1069 }
 0x607   :  { %4829 = vrcp.f32 %v1070_v40 }
 0x611   :  { %v4830_v41 = vpop.eup %4829 }
 0x612   :  { %v1100_v42 = vmul.f32 %v4830_v41, %v5415_v55 }
 0x614   :  { %4486 = vmatmul.mubr.msk.f32.vlgmr.msra.gmra.mrb[8].mxu1 %vm389_vm3, %v1100_v42 }
 0x615   :  { %4494 = vmatpush3.msra.mxu1 %v1261_v43  ;;  %4495 = vmatprep.mubr.msk.f32.mxu1 %vm5049_vm2, %v5048_v48 }
 0x616   :  { %4503 = vmatprep.subr.mxu1 %v5048_v48 }
 0x65f   :  { %v1073_v46 = vpop.xlane.xlu1 %1072 }
 0x660   :  { %4831 = vrcp.f32 %v1073_v46  ;;  %v1076_v57 = vpop.xlane.xlu0 %1075 }
 0x661   :  { %4833 = vrcp.f32 %v1076_v57 }
 0x663   :  { %v1079_v49 = vpop.xlane.xlu1 %1078 }
 0x664   :  { %4835 = vrcp.f32 %v1079_v49 }
 0x667   :  { %v1085_v50 = vpop.xlane.xlu1 %1084  ;;  %v1082_v51 = vpop.xlane.xlu0 %1081 }
 0x668   :  { %4837 = vrcp.f32 %v1085_v50 }
 0x669   :  { %4839 = vrcp.f32 %v1082_v51 }
 0x66a   :  { %v4832_v59 = vpop.eup %4831 }
 0x66b   :  { %v4834_v61 = vpop.eup %4833  ;;  %v1101_v62 = vmul.f32 %v4832_v59, %v4816_v21  ;;  %v1091_v63 = vpop.xlane.xlu1 %1090 }
 0x66c   :  { %v1088_v0 = vpop.xlane.xlu0 %1087  ;;  %v1102_v1 = vmul.f32 %v4834_v61, %v4818_v24  ;;  %4841 = vrcp.f32 %v1091_v63 }
 0x66d   :  { %4843 = vrcp.f32 %v1088_v0  ;;  %4491 = vmatmul.mubr.msk.f32.vlgmr.msra.gmra.mrb[12].mxu0 %vm389_vm3, %v1101_v62 }
 0x66e   :  { %v4836_v2 = vpop.eup %4835  ;;  %4496 = vmatmul.mubr.msk.f32.vlgmr.msra.gmra.mrb[10].mxu1 %vm389_vm3, %v1102_v1  ;;  %4499 = vmatpush3.msra.mxu0 %v1337_v44 }
 0x66f   :  { %v1103_v55 = vmul.f32 %v4836_v2, %v4820_v28  ;;  %4504 = vmatpush3.msra.mxu1 %v1413_v39  ;;  %4500 = vmatprep.mubr.msk.f32.mxu0 %vm5049_vm2, %v5048_v48  ;;  %v1641_v56 = vpop.permute.xlu1 %1640 }
 0x670   :  { %4508 = vmatprep.subr.mxu0 %v5048_v48  ;;  %4505 = vmatprep.mubr.msk.f32.mxu1 %vm5049_vm2, %v5048_v48  ;;  %v1565_v6 = vpop.permute.xlu0 %1564 }
 0x671   :  { %4501 = vmatmul.mubr.msk.f32.vlgmr.msra.gmra.mrb[14].mxu0 %vm389_vm3, %v1103_v55  ;;  %4513 = vmatprep.subr.mxu1 %v5048_v48 }
 0x672   :  { %v4838_v54 = vpop.eup %4837  ;;  %4509 = vmatpush3.msra.mxu0 %v1489_v60  ;;  %4510 = vmatprep.mubr.msk.f32.mxu0 %vm5049_vm2, %v5048_v48  ;;  %v4212_v60 = vld [vmem:[%s5894_s10] ss:$0 sm:$0xff] }
 0x673   :  { %v4840_v52 = vpop.eup %4839  ;;  %v1105_v3 = vmul.f32 %v4838_v54, %v4822_v30  ;;  %4518 = vmatprep.subr.mxu0 %v5048_v48 }
 0x674   :  { %v1104_v4 = vmul.f32 %v4840_v52, %v4824_v31 }
 0x675   :  { %4511 = vmatmul.mubr.msk.f32.vlgmr.msra.gmra.mrb[16].mxu0 %vm389_vm3, %v1105_v3 }
 0x676   :  { %v4842_v5 = vpop.eup %4841  ;;  %4506 = vmatmul.mubr.msk.f32.vlgmr.msra.gmra.mrb[12].mxu1 %vm389_vm3, %v1104_v4  ;;  %4519 = vmatpush3.msra.mxu0 %v1641_v56  ;;  %v1886_v56 = vld [vmem:[%s5897_s13 + $0x8] sm:$0xff] }
 0x677   :  { %v4844_v53 = vpop.eup %4843  ;;  %v1107_v7 = vmul.f32 %v4842_v5, %v5426_v35  ;;  %4514 = vmatpush3.msra.mxu1 %v1565_v6  ;;  %4515 = vmatprep.mubr.msk.f32.mxu1 %vm5049_vm2, %v5048_v48  ;;  %v1887_v6 = vld [vmem:[%s5897_s13 + $0x10] sm:$0xff] }
 0x678   :  { %v1106_v58 = vmul.f32 %v4844_v53, %v5428_v36  ;;  %4520 = vmatprep.mubr.msk.f32.mxu0 %vm5049_vm2, %v5048_v48  ;;  %4719 = vmatprep.subr.bf16.mxu1 %v4718_v14  ;;  %v1888_v53 = vld [vmem:[%s5897_s13 + $0x18] sm:$0xff] }
 0x679   :  { %4521 = vmatmul.mubr.msk.f32.vlgmr.msra.gmra.mrb[18].mxu0 %vm389_vm3, %v1107_v7  ;;  %v4730_v7 = vpack.c.bf16 %v1888_v53, %v1887_v6 }
 0x67a   :  { %4516 = vmatmul.mubr.msk.f32.vlgmr.msra.gmra.mrb[14].mxu1 %vm389_vm3, %v1106_v58 }
 0x67b   :  { %4721 = vmatpush3.bf16.msra.mxu1 %v4718_v14 }
 0x67c   :  { %4723 = vmatprep.subr.bf16.mxu1 %v4722_v17 }
 0x67f   :  { %4725 = vmatpush3.bf16.msra.mxu1 %v4722_v17 }
 0x6e7   :  { %v1180_v8 = vpop.f32.mrb[8].mxu1 }
 0x6e8   :  { %v4487_v11 = vpop.f32.mrb[9].mxu1 }
 0x740   :  { %v1256_v18 = vpop.f32.mrb[12].mxu0 }
 0x741   :  { %v1332_v19 = vpop.f32.mrb[10].mxu1  ;;  %v4492_v20 = vpop.f32.mrb[13].mxu0  ;;  %1717 = vrot.lane.b32.xlu0 %v1256_v18, %s5924_s0  ;;  %v4216_v18 = vld [vmem:[%s5896_s12] ss:$0 sm:$0xff] }
 0x742   :  { %1721 = vrot.lane.b32.xlu1 %v1332_v19, %s5055_s21  ;;  %v4497_v21 = vpop.f32.mrb[11].mxu1 }
 0x744   :  { %v1408_v22 = vpop.f32.mrb[14].mxu0 }
 0x745   :  { %v4502_v23 = vpop.f32.mrb[15].mxu0 }
 0x746   :  { %1725 = vrot.lane.b32.xlu1 %v1408_v22, %s5056_s6 }
 0x748   :  { %v1560_v24 = vpop.f32.mrb[16].mxu0 }
 0x749   :  { %v1484_v25 = vpop.f32.mrb[12].mxu1  ;;  %v4512_v26 = vpop.f32.mrb[17].mxu0  ;;  %1733 = vrot.lane.b32.xlu0 %v1560_v24, %s5924_s0 }
 0x74a   :  { %v4507_v27 = vpop.f32.mrb[13].mxu1  ;;  %v1996_v26 = vld [vmem:[%s5899_s15 + $0x8] sm:$0xff] }
 0x74c   :  { %v1712_v28 = vpop.f32.mrb[18].mxu0 }
 0x74d   :  { %v1636_v29 = vpop.f32.mrb[14].mxu1  ;;  %v4522_v30 = vpop.f32.mrb[19].mxu0  ;;  %1741 = vrot.lane.b32.xlu1 %v1712_v28, %s5056_s6  ;;  %v1997_v28 = vld [vmem:[%s5899_s15 + $0x10] sm:$0xff] }
 0x74e   :  { %1737 = vrot.lane.b32.xlu0 %v1636_v29, %s5055_s21  ;;  %v4517_v31 = vpop.f32.mrb[15].mxu1  ;;  %v1998_v29 = vld [vmem:[%s5899_s15 + $0x18] sm:$0xff] }
 0x74f   :  { %v4738_v30 = vpack.c.bf16 %v1998_v29, %v1997_v28  ;;  %v1999_v31 = vld [vmem:[%s5899_s15 + $0x20] sm:$0xff] }
 0x7b3   :  { %v1718_v32 = vpop.permute.xlu0 %1717 }
 0x7b4   :  { %v1722_v34 = vpop.permute.xlu1 %1721  ;;  %v1728_v35 = vsel %vm389_vm3, %v1180_v8, %v1718_v32  ;;  %v2000_v32 = vld [vmem:[%s5899_s15 + $0x28] sm:$0xff] }
 0x7b5   :  { %v1729_v37 = vsel %vm145_vm0, %v1728_v35, %v1722_v34  ;;  %v4742_v34 = vpack.c.bf16 %v2000_v32, %v1999_v31  ;;  %v2001_v35 = vld [vmem:[%s5899_s15 + $0x30] sm:$0xff]  ;;  %v4223_v32 = vld [vmem:[%s5901_s17] ss:$0 sm:$0xff] }
 0x7b8   :  { %v1726_v36 = vpop.permute.xlu1 %1725 }
 0x7b9   :  { %v1731_v38 = vsel %vm1730_vm4, %v1729_v37, %v1726_v36  ;;  %v2002_v36 = vld [vmem:[%s5899_s15 + $0x38] sm:$0xff] }
 0x7ba   :  { %4531 = vmatprep.mubr.msk.f32.mxu1 %vm231_vm1, %v1731_v38  ;;  %v4746_v37 = vpack.c.bf16 %v2002_v36, %v2001_v35  ;;  %v4217_v38 = vld [vmem:[%s5898_s14] ss:$0 sm:$0xff] }
 0x7bb   :  { %v1734_v39 = vpop.permute.xlu0 %1733 }
 0x7bc   :  { %v1744_v41 = vsel %vm389_vm3, %v1484_v25, %v1734_v39  ;;  %v1995_v25 = vld [vmem:[%s5899_s15] sm:$0xff] }
 0x7bd   :  { %v4734_v27 = vpack.c.bf16 %v1996_v26, %v1995_v25 }
 0x7bf   :  { %v1742_v40 = vpop.permute.xlu1 %1741  ;;  %4735 = vmatprep.subr.bf16.mxu1 %v4734_v27 }
 0x7c0   :  { %v1738_v42 = vpop.permute.xlu0 %1737 }
 0x7c1   :  { %v1745_v43 = vsel %vm145_vm0, %v1744_v41, %v1738_v42 }
 0x7c2   :  { %v1746_v44 = vsel %vm1730_vm4, %v1745_v43, %v1742_v40 }
 0x7c3   :  { %4532 = vmatmul.mubr.msk.f32.vlgmr.msra.gmra.mrb[16].mxu1 %vm231_vm1, %v1746_v44 }
 0x7c4   :  { %4737 = vmatpush3.bf16.msra.mxu1 %v4734_v27 }
 0x7c5   :  { %4739 = vmatprep.subr.bf16.mxu1 %v4738_v30 }
 0x7c8   :  { %4741 = vmatpush3.bf16.msra.mxu1 %v4738_v30 }
 0x7c9   :  { %4743 = vmatprep.subr.bf16.mxu1 %v4742_v34 }
 0x7cc   :  { %4745 = vmatpush3.bf16.msra.mxu1 %v4742_v34 }
 0x7cd   :  { %4747 = vmatprep.subr.bf16.mxu1 %v4746_v37 }
 0x7d0   :  { %4749 = vmatpush3.bf16.msra.mxu1 %v4746_v37  ;;  %v4224_v37 = vld [vmem:[%s5902_s18] ss:$0 sm:$0xff] }
 0x7d1   :  { %4585 = vmatprep.subr.mxu1 %v5048_v48 }
 0x896   :  { %v4533_v46 = vpop.f32.mrb[16].mxu1 }
 0x897   :  { %v1836_v57 = vadd.f32 %v4533_v46, %v4212_v60  ;;  %v1830_v49 = vpop.f32.mrb[17].mxu1 }
 0x898   :  { %v1831_v50 = vadd.f32 %v4212_v60, %v1830_v49 }
 0x899   :  { %v1840_v51 = vadd.f32 %v1836_v57, %v5271_v47 }
 0x89a   :  { %v1839_v59 = vadd.f32 %v1831_v50, %v5267_v45  ;;  %v1885_v45 = vld [vmem:[%s5897_s13] sm:$0xff] }
 0x89b   :  { %v1846_v61 = vsel %vm231_vm1, %v1840_v51, 0.0  ;;  %v4726_v5 = vpack.c.bf16 %v1886_v56, %v1885_v45 }
 0x89c   :  { %1847 = vadd.xlane.f32.xlu1 %v1846_v61  ;;  %v1843_v62 = vsel %vm231_vm1, %v1839_v59, 0.0 }
 0x89d   :  { %1844 = vadd.xlane.f32.xlu0 %v1843_v62  ;;  %4727 = vmatprep.subr.bf16.mxu0 %v4726_v5 }
 0x89e   :  { %4729 = vmatpush3.bf16.msra.mxu0 %v4726_v5 }
 0x89f   :  { %4731 = vmatprep.subr.bf16.mxu0 %v4730_v7 }
 0x8a2   :  { %4733 = vmatpush3.bf16.msra.mxu0 %v4730_v7 }
 0x929   :  { %v1848_v63 = vpop.xlane.xlu1 %1847 }
 0x92a   :  { %v1850_v0 = vmul.f32 0.03125, %v1848_v63  ;;  %v1845_v1 = vpop.xlane.xlu0 %1844 }
 0x92b   :  { %v1849_v2 = vmul.f32 0.03125, %v1845_v1 }
 0x92c   :  { %v1852_v55 = vsub.f32 %v1840_v51, %v1850_v0 }
 0x92d   :  { %v1851_v54 = vsub.f32 %v1839_v59, %v1849_v2 }
 0x92e   :  { %v1854_v4 = vmul.f32 %v1852_v55, %v1852_v55 }
 0x92f   :  { %v1853_v52 = vmul.f32 %v1851_v54, %v1851_v54 }
 0x930   :  { %v1858_v47 = vsel %vm231_vm1, %v1854_v4, 0.0 }
 0x931   :  { %v1855_v3 = vsel %vm231_vm1, %v1853_v52, 0.0 }
 0x932   :  { %1856 = vadd.xlane.f32.xlu0 %v1855_v3  ;;  %v4220_v3 = vld [vmem:[%s5900_s16] ss:$0 sm:$0xff] }
 0x936   :  { %1859 = vadd.xlane.f32.xlu0 %v1858_v47 }
 0x9bf   :  { %v1857_v58 = vpop.xlane.xlu0 %1856 }
 0x9c0   :  { %v1861_v8 = vmul.f32 0.03125, %v1857_v58 }
 0x9c2   :  { %v1863_v11 = vadd.f32 1e-12, %v1861_v8 }
 0x9c3   :  { %v1860_v12 = vpop.xlane.xlu0 %1859 }
 0x9c4   :  { %4845 = vrsqrt.f32 %v1863_v11  ;;  %v1862_v13 = vmul.f32 0.03125, %v1860_v12 }
 0x9c6   :  { %v1864_v14 = vadd.f32 1e-12, %v1862_v13 }
 0x9c8   :  { %4847 = vrsqrt.f32 %v1864_v14 }
 0x9ce   :  { %v4846_v15 = vpop.eup %4845 }
 0x9cf   :  { %v1867_v17 = vmul.f32 %v4846_v15, %v1851_v54 }
 0x9d1   :  { %v1875_v19 = vmul.f32 %v4215_v16, %v1867_v17 }
 0x9d2   :  { %v4848_v20 = vpop.eup %4847 }
 0x9d3   :  { %v1868_v21 = vmul.f32 %v4848_v20, %v1852_v55  ;;  %v1883_v22 = vadd.f32 %v4216_v18, %v1875_v19  ;;  %v4225_v19 = vld [vmem:[%s5891_s7 + $0x20] sm:$0xff]  ;;  %v4226_v20 = vld [vmem:[%s5891_s7 + $0x28] sm:$0xff] }
 0x9d5   :  { %v1876_v23 = vmul.f32 %v4215_v16, %v1868_v21  ;;  %4542 = vmatprep.mubr.msk.f32.mxu0 %vm231_vm1, %v1883_v22  ;;  %v4750_v21 = vpack.c.bf16 %v4226_v20, %v4225_v19 }
 0x9d7   :  { %v1884_v24 = vadd.f32 %v4216_v18, %v1876_v23  ;;  %v4228_v23 = vld [vmem:[%s5891_s7 + $0x38] sm:$0xff]  ;;  %4751 = vmatprep.subr.bf16.mxu0 %v4750_v21 }
 0x9d9   :  { %4543 = vmatmul.mubr.msk.f32.vlgmr.msra.gmra.mrb[20].mxu0 %vm231_vm1, %v1884_v24 }
 0x9da   :  { %4753 = vmatpush3.bf16.msra.mxu0 %v4750_v21 }
 0xaac   :  { %v4544_v39 = vpop.f32.mrb[20].mxu0 }
 0xaad   :  { %v1974_v40 = vadd.f32 %v4544_v39, %v4217_v38  ;;  %v1968_v41 = vpop.f32.mrb[21].mxu0 }
 0xaae   :  { %v1969_v42 = vadd.f32 %v4217_v38, %v1968_v41 }
 0xaaf   :  { %v1980_v43 = vmul.f32 0.044715, %v1974_v40  ;;  %v1978_v55 = vmul.f32 0.5, %v1974_v40 }
 0xab0   :  { %v1979_v44 = vmul.f32 0.044715, %v1969_v42  ;;  %v1977_v1 = vmul.f32 0.5, %v1969_v42 }
 0xab1   :  { %v1982_v60 = vmul.f32 %v1980_v43, %v1974_v40 }
 0xab2   :  { %v1981_v46 = vmul.f32 %v1979_v44, %v1969_v42 }
 0xab3   :  { %v1984_v57 = vmul.f32 %v1982_v60, %v1974_v40 }
 0xab4   :  { %v1983_v49 = vmul.f32 %v1981_v46, %v1969_v42 }
 0xab5   :  { %v1986_v50 = vadd.f32 %v1984_v57, %v1974_v40 }
 0xab6   :  { %v1985_v51 = vadd.f32 %v1983_v49, %v1969_v42  ;;  %v4230_v42 = vld [vmem:[%s5892_s8 + $0x1] ss:$0 sm:$0xff] }
 0xab7   :  { %v1988_v59 = vmul.f32 0.7978846, %v1986_v50 }
 0xab8   :  { %v1987_v61 = vmul.f32 0.7978846, %v1985_v51 }
 0xab9   :  { %4849 = vtanh.f32 %v1988_v59 }
 0xaba   :  { %4851 = vtanh.f32 %v1987_v61 }
 0xac3   :  { %v4850_v62 = vpop.eup %4849 }
 0xac4   :  { %v4852_v63 = vpop.eup %4851  ;;  %v1992_v0 = vadd.f32 1.0, %v4850_v62 }
 0xac5   :  { %v1991_v2 = vadd.f32 1.0, %v4852_v63 }
 0xac6   :  { %v1994_v52 = vmul.f32 %v1992_v0, %v1978_v55 }
 0xac7   :  { %v1993_v54 = vmul.f32 %v1991_v2, %v1977_v1 }
 0xac9   :  { %4561 = vmatprep.mubr.msk.f32.mxu1 %vm2010_vm5, %v1993_v54 }
 0xaca   :  { %4562 = vmatmul.mubr.msk.f32.vlgmr.msra.gmra.mrb[18].mxu1 %vm2010_vm5, %v1994_v52 }
 0xacb   :  { %4587 = vmatprep.mubr.msk.f32.mxu1 %vm5049_vm2, %v5048_v48 }
 0xb9d   :  { %v4563_v4 = vpop.f32.mrb[18].mxu1 }
 0xb9e   :  { %v2089_v47 = vadd.f32 %v4563_v4, %v4220_v3  ;;  %v2083_v45 = vpop.f32.mrb[19].mxu1 }
 0xb9f   :  { %v2084_v56 = vadd.f32 %v4220_v3, %v2083_v45 }
 0xba0   :  { %v2093_v5 = vadd.f32 %v2089_v47, %v1884_v24 }
 0xba1   :  { %v2092_v6 = vadd.f32 %v2084_v56, %v1883_v22  ;;  %v4227_v22 = vld [vmem:[%s5891_s7 + $0x30] sm:$0xff] }
 0xba2   :  { %v2099_v53 = vsel %vm231_vm1, %v2093_v5, 0.0  ;;  %v4754_v24 = vpack.c.bf16 %v4228_v23, %v4227_v22 }
 0xba3   :  { %2100 = vadd.xlane.f32.xlu1 %v2099_v53  ;;  %v2096_v7 = vsel %vm231_vm1, %v2092_v6, 0.0 }
 0xba4   :  { %2097 = vadd.xlane.f32.xlu0 %v2096_v7  ;;  %4755 = vmatprep.subr.bf16.mxu0 %v4754_v24 }
 0xba5   :  { %4757 = vmatpush3.bf16.msra.mxu0 %v4754_v24 }
 0xba6   :  { %4575 = vmatprep.subr.mxu0 %v5048_v48 }
 0xc30   :  { %v2101_v58 = vpop.xlane.xlu1 %2100 }
 0xc31   :  { %v2103_v8 = vmul.f32 0.03125, %v2101_v58  ;;  %v2098_v11 = vpop.xlane.xlu0 %2097 }
 0xc32   :  { %v2102_v12 = vmul.f32 0.03125, %v2098_v11 }
 0xc33   :  { %v2105_v13 = vsub.f32 %v2093_v5, %v2103_v8 }
 0xc34   :  { %v2104_v14 = vsub.f32 %v2092_v6, %v2102_v12 }
 0xc35   :  { %v2107_v15 = vmul.f32 %v2105_v13, %v2105_v13 }
 0xc36   :  { %v2106_v16 = vmul.f32 %v2104_v14, %v2104_v14 }
 0xc37   :  { %v2111_v17 = vsel %vm231_vm1, %v2107_v15, 0.0 }
 0xc38   :  { %2112 = vadd.xlane.f32.xlu1 %v2111_v17  ;;  %v2108_v18 = vsel %vm231_vm1, %v2106_v16, 0.0 }
 0xc39   :  { %2109 = vadd.xlane.f32.xlu0 %v2108_v18 }
 0xcc5   :  { %v2113_v25 = vpop.xlane.xlu1 %2112 }
 0xcc6   :  { %v2115_v26 = vmul.f32 0.03125, %v2113_v25  ;;  %v2110_v27 = vpop.xlane.xlu0 %2109 }
 0xcc7   :  { %v2114_v28 = vmul.f32 0.03125, %v2110_v27 }
 0xcc8   :  { %v2117_v29 = vadd.f32 1e-12, %v2115_v26 }
 0xcc9   :  { %v2116_v30 = vadd.f32 1e-12, %v2114_v28 }
 0xcca   :  { %4853 = vrsqrt.f32 %v2117_v29 }
 0xccb   :  { %4855 = vrsqrt.f32 %v2116_v30 }
 0xcd4   :  { %v4854_v31 = vpop.eup %4853 }
 0xcd5   :  { %v4856_v34 = vpop.eup %4855  ;;  %v2121_v35 = vmul.f32 %v4854_v31, %v2105_v13 }
 0xcd6   :  { %v2120_v36 = vmul.f32 %v4856_v34, %v2104_v14 }
 0xcd7   :  { %v2129_v38 = vmul.f32 %v4223_v32, %v2121_v35 }
 0xcd8   :  { %v2128_v39 = vmul.f32 %v4223_v32, %v2120_v36 }
 0xcd9   :  { %v5580_v41 = vadd.f32 %v4224_v37, %v2129_v38 }
 0xcda   :  { %v5578_v40 = vadd.f32 %v4224_v37, %v2128_v39 }
 0xcdc   :  { %4572 = vmatprep.mubr.msk.f32.mxu0 %vm231_vm1, %v5578_v40 }
 0xcdd   :  { %4573 = vmatmul.mubr.msk.f32.vlgmr.msra.gmra.mrb[22].mxu0 %vm231_vm1, %v5580_v41 }
 0xcde   :  { %4577 = vmatprep.mubr.msk.f32.mxu0 %vm5049_vm2, %v5048_v48 }
 0xdb0   :  { %v4574_v43 = vpop.f32.mrb[22].mxu0 }
 0xdb1   :  { %v2223_v44 = vpop.f32.mrb[23].mxu0  ;;  %v5597_v46 = vadd.f32 %v4574_v43, %v4230_v42 }
 0xdb2   :  { %v5591_v60 = vadd.f32 %v4230_v42, %v2223_v44 }
 0xdb4   :  { %2235 = vrot.lane.b32.xlu1 %v5591_v60, %s5050_s1  ;;  %2233 = vrot.lane.b32.xlu0 %v5591_v60, %s5051_s30 }
 0xdb8   :  { %2237 = vrot.lane.b32.xlu1 %v5591_v60, %s5052_s2  ;;  %2242 = vrot.lane.b32.xlu0 %v5597_v46, %s5050_s1 }
 0xdbc   :  { %2240 = vrot.lane.b32.xlu1 %v5597_v46, %s5051_s30  ;;  %2246 = vrot.lane.b32.xlu0 %v5591_v60, %s5053_s27 }
 0xdc0   :  { %2244 = vrot.lane.b32.xlu1 %v5597_v46, %s5052_s2 }
 0xe26   :  { %v5609_v57 = vpop.permute.xlu1 %2235  ;;  %v5611_v49 = vpop.permute.xlu0 %2233 }
 0xe27   :  { %2398 = vrot.lane.b32.xlu0 %v5609_v57, %s5053_s27  ;;  %2322 = vrot.lane.b32.xlu1 %v5611_v49, %s5053_s27 }
 0xe2a   :  { %v5617_v50 = vpop.permute.xlu1 %2237  ;;  %v5619_v51 = vpop.permute.xlu0 %2242 }
 0xe2b   :  { %2550 = vrot.lane.b32.xlu0 %v5597_v46, %s5053_s27  ;;  %2474 = vrot.lane.b32.xlu1 %v5617_v50, %s5053_s27 }
 0xe2e   :  { %v5625_v59 = vpop.permute.xlu1 %2240  ;;  %v2247_v61 = vpop.permute.xlu0 %2246 }
 0xe2f   :  { %2626 = vrot.lane.b32.xlu1 %v5625_v59, %s5053_s27  ;;  %2702 = vrot.lane.b32.xlu0 %v5619_v51, %s5053_s27 }
 0xe30   :  { %4576 = vmatpush3.xpose.msk.msra.mxu0 %vm389_vm3, %v2247_v61 }
 0xe31   :  { %4580 = vmatprep.subr.mxu0 %v5048_v48 }
 0xe32   :  { %v5633_v62 = vpop.permute.xlu1 %2244 }
 0xe33   :  { %4578 = vmatmul.mubr.msk.f32.vlgmr.msra.gmra.mrb[24].mxu0 %vm389_vm3, %v5591_v60  ;;  %2778 = vrot.lane.b32.xlu1 %v5633_v62, %s5053_s27 }
 0xe34   :  { %4582 = vmatprep.mubr.msk.f32.mxu0 %vm5049_vm2, %v5048_v48 }
 0xe99   :  { %v2323_v63 = vpop.permute.xlu1 %2322  ;;  %v2399_v0 = vpop.permute.xlu0 %2398 }
 0xe9a   :  { %4581 = vmatpush3.xpose.msk.msra.mxu0 %vm389_vm3, %v2323_v63  ;;  %4586 = vmatpush3.xpose.msk.msra.mxu1 %vm389_vm3, %v2399_v0 }
 0xe9b   :  { %4590 = vmatprep.subr.mxu0 %v5048_v48  ;;  %4595 = vmatprep.subr.mxu1 %v5048_v48 }
 0xe9d   :  { %v2475_v1 = vpop.permute.xlu1 %2474  ;;  %4583 = vmatmul.mubr.msk.f32.vlgmr.msra.gmra.mrb[26].mxu0 %vm389_vm3, %v5611_v49  ;;  %4588 = vmatmul.mubr.msk.f32.vlgmr.msra.gmra.mrb[20].mxu1 %vm389_vm3, %v5609_v57  ;;  %v2551_v2 = vpop.permute.xlu0 %2550 }
 0xe9e   :  { %4591 = vmatpush3.xpose.msk.msra.mxu0 %vm389_vm3, %v2475_v1  ;;  %4596 = vmatpush3.xpose.msk.msra.mxu1 %vm389_vm3, %v2551_v2 }
 0xe9f   :  { %4592 = vmatprep.mubr.msk.f32.mxu0 %vm5049_vm2, %v5048_v48  ;;  %4597 = vmatprep.mubr.msk.f32.mxu1 %vm5049_vm2, %v5048_v48 }
 0xea0   :  { %4600 = vmatprep.subr.mxu0 %v5048_v48  ;;  %4605 = vmatprep.subr.mxu1 %v5048_v48 }
 0xea1   :  { %v2627_v55 = vpop.permute.xlu1 %2626  ;;  %4593 = vmatmul.mubr.msk.f32.vlgmr.msra.gmra.mrb[28].mxu0 %vm389_vm3, %v5617_v50  ;;  %4598 = vmatmul.mubr.msk.f32.vlgmr.msra.gmra.mrb[22].mxu1 %vm389_vm3, %v5597_v46  ;;  %v2703_v54 = vpop.permute.xlu0 %2702 }
 0xea2   :  { %4601 = vmatpush3.xpose.msk.msra.mxu0 %vm389_vm3, %v2627_v55  ;;  %4606 = vmatpush3.xpose.msk.msra.mxu1 %vm389_vm3, %v2703_v54 }
 0xea3   :  { %4602 = vmatprep.mubr.msk.f32.mxu0 %vm5049_vm2, %v5048_v48  ;;  %4607 = vmatprep.mubr.msk.f32.mxu1 %vm5049_vm2, %v5048_v48 }
 0xea4   :  { %4610 = vmatprep.subr.mxu0 %v5048_v48  ;;  %4615 = vmatprep.subr.mxu1 %v5048_v48 }
 0xea5   :  { %v2779_v52 = vpop.permute.xlu1 %2778  ;;  %4603 = vmatmul.mubr.msk.f32.vlgmr.msra.gmra.mrb[30].mxu0 %vm389_vm3, %v5625_v59  ;;  %4608 = vmatmul.mubr.msk.f32.vlgmr.msra.gmra.mrb[24].mxu1 %vm389_vm3, %v5619_v51 }
 0xea6   :  { %4611 = vmatpush3.xpose.msk.msra.mxu0 %vm389_vm3, %v2779_v52  ;;  %4612 = vmatprep.mubr.msk.f32.mxu0 %vm5049_vm2, %v5048_v48 }
 0xea7   :  { %4620 = vmatprep.subr.mxu0 %v5048_v48  ;;  %4617 = vmatprep.mubr.msk.f32.mxu1 %vm5049_vm2, %v5048_v48 }
 0xea9   :  { %4613 = vmatmul.mubr.msk.f32.vlgmr.msra.gmra.mrb[32].mxu0 %vm389_vm3, %v5633_v62 }
 0xeaa   :  { %4622 = vmatprep.mubr.msk.f32.mxu0 %vm5049_vm2, %v5048_v48 }
 0xf06   :  { %v2318_v3 = vpop.f32.mrb[24].mxu0 }
 0xf07   :  { %v2854_v4 = vmul.f32 0.35355338, %v2318_v3  ;;  %v4579_v47 = vpop.f32.mrb[25].mxu0 }
 0xf09   :  { %v2862_v45 = vadd.f32 %v2854_v4, %v5382_v10 }
 0xf0b   :  { %v2870_v56 = vsel %vm389_vm3, %v2862_v45, -inf }
 0xf0c   :  { %2871 = vmax.xlane.f32.xlu0 %v2870_v56 }
 0xf70   :  { %v2394_v5 = vpop.f32.mrb[26].mxu0  ;;  %v2470_v6 = vpop.f32.mrb[20].mxu1 }
 0xf71   :  { %v2855_v53 = vmul.f32 0.35355338, %v2394_v5  ;;  %v2856_v7 = vmul.f32 0.35355338, %v2470_v6  ;;  %v4584_v58 = vpop.f32.mrb[27].mxu0  ;;  %v4589_v8 = vpop.f32.mrb[21].mxu1 }
 0xf73   :  { %v2863_v11 = vadd.f32 %v2855_v53, %v5382_v10  ;;  %v2864_v12 = vadd.f32 %v2856_v7, %v5382_v10 }
 0xf74   :  { %v2546_v13 = vpop.f32.mrb[28].mxu0  ;;  %v2622_v14 = vpop.f32.mrb[22].mxu1 }
 0xf75   :  { %v2857_v15 = vmul.f32 0.35355338, %v2546_v13  ;;  %v4594_v16 = vpop.f32.mrb[29].mxu0  ;;  %v4599_v17 = vpop.f32.mrb[23].mxu1  ;;  %v2858_v18 = vmul.f32 0.35355338, %v2622_v14 }
 0xf76   :  { %v2873_v19 = vsel %vm389_vm3, %v2863_v11, -inf  ;;  %v2876_v20 = vsel %vm389_vm3, %v2864_v12, -inf }
 0xf77   :  { %2874 = vmax.xlane.f32.xlu1 %v2873_v19  ;;  %2877 = vmax.xlane.f32.xlu0 %v2876_v20  ;;  %v2865_v21 = vadd.f32 %v2857_v15, %v5382_v10  ;;  %v2866_v29 = vadd.f32 %v2858_v18, %v5391_v33 }
 0xf78   :  { %v2698_v22 = vpop.f32.mrb[30].mxu0  ;;  %v2774_v23 = vpop.f32.mrb[24].mxu1 }
 0xf79   :  { %v2859_v24 = vmul.f32 0.35355338, %v2698_v22  ;;  %v4604_v25 = vpop.f32.mrb[31].mxu0  ;;  %v4609_v26 = vpop.f32.mrb[25].mxu1  ;;  %v2860_v27 = vmul.f32 0.35355338, %v2774_v23 }
 0xf7a   :  { %v2879_v28 = vsel %vm389_vm3, %v2865_v21, -inf  ;;  %v2882_v10 = vsel %vm389_vm3, %v2866_v29, -inf }
 0xf7b   :  { %2880 = vmax.xlane.f32.xlu0 %v2879_v28  ;;  %v2867_v30 = vadd.f32 %v2859_v24, %v5391_v33  ;;  %v2868_v36 = vadd.f32 %v2860_v27, %v5391_v33 }
 0xf7c   :  { %v2850_v31 = vpop.f32.mrb[32].mxu0 }
 0xf7d   :  { %v2861_v32 = vmul.f32 0.35355338, %v2850_v31  ;;  %v4614_v34 = vpop.f32.mrb[33].mxu0  ;;  %v2885_v35 = vsel %vm389_vm3, %v2867_v30, -inf  ;;  %v2888_v39 = vsel %vm389_vm3, %v2868_v36, -inf }
 0xf7e   :  { %2886 = vmax.xlane.f32.xlu1 %v2885_v35 }
 0xf7f   :  { %2883 = vmax.xlane.f32.xlu0 %v2882_v10  ;;  %v2869_v37 = vadd.f32 %v2861_v32, %v5391_v33 }
 0xf81   :  { %v2891_v38 = vsel %vm389_vm3, %v2869_v37, -inf }
 0xf82   :  { %2892 = vmax.xlane.f32.xlu1 %v2891_v38 }
 0xf83   :  { %2889 = vmax.xlane.f32.xlu0 %v2888_v39 }
 0xf93   :  { %3034 = vrot.lane.b32.xlu1 %v5611_v49, %s5054_s20 }
 0xf97   :  { %3110 = vrot.lane.b32.xlu1 %v5609_v57, %s5054_s20 }
 0xf99   :  { %2958 = vrot.lane.b32.xlu0 %v5591_v60, %s5054_s20  ;;  %v2872_v33 = vpop.xlane.xlu0 %2871 }
 0xf9a   :  { %v2894_v42 = vsub.f32 %v2862_v45, %v2872_v33 }
 0xf9b   :  { %3186 = vrot.lane.b32.xlu1 %v5617_v50, %s5054_s20 }
 0xf9c   :  { %v2902_v43 = vmul.f32 1.442695, %v2894_v42 }
 0xf9d   :  { %3262 = vrot.lane.b32.xlu0 %v5597_v46, %s5054_s20 }
 0xf9e   :  { %4857 = vpow2.f32 %v2902_v43 }
 0xf9f   :  { %3338 = vrot.lane.b32.xlu1 %v5625_v59, %s5054_s20 }
 0xfa8   :  { %v5711_v44 = vpop.eup %4857 }
 0xfa9   :  { %v2918_v57 = vsel %vm389_vm3, %v5711_v44, 0.0 }
 0xfbc   :  { %2919 = vadd.xlane.f32.xlu0 %v2918_v57 }
0x1004   :  { %v2875_v60 = vpop.xlane.xlu1 %2874  ;;  %v2878_v49 = vpop.xlane.xlu0 %2877 }
0x1005   :  { %v2895_v61 = vsub.f32 %v2863_v11, %v2875_v60  ;;  %v2896_v50 = vsub.f32 %v2864_v12, %v2878_v49 }
0x1007   :  { %v2904_v63 = vmul.f32 1.442695, %v2895_v61  ;;  %v2906_v0 = vmul.f32 1.442695, %v2896_v50 }
0x1008   :  { %v2881_v46 = vpop.xlane.xlu0 %2880 }
0x1009   :  { %4859 = vpow2.f32 %v2904_v63  ;;  %v2897_v1 = vsub.f32 %v2865_v21, %v2881_v46 }
0x100a   :  { %4861 = vpow2.f32 %v2906_v0 }
0x100b   :  { %v2908_v59 = vmul.f32 1.442695, %v2897_v1  ;;  %v2887_v2 = vpop.xlane.xlu1 %2886 }
0x100c   :  { %v2899_v55 = vsub.f32 %v2867_v30, %v2887_v2  ;;  %v2884_v54 = vpop.xlane.xlu0 %2883  ;;  %v4257_v2 = vld [vmem:[%s5893_s9 + $0x20] sm:$0xff] }
0x100d   :  { %4863 = vpow2.f32 %v2908_v59  ;;  %v2898_v52 = vsub.f32 %v2866_v29, %v2884_v54 }
0x100e   :  { %v2912_v3 = vmul.f32 1.442695, %v2899_v55  ;;  %v4258_v55 = vld [vmem:[%s5893_s9 + $0x28] sm:$0xff] }
0x100f   :  { %v2910_v4 = vmul.f32 1.442695, %v2898_v52  ;;  %v2893_v47 = vpop.xlane.xlu1 %2892  ;;  %v4758_v54 = vpack.c.bf16 %v4258_v55, %v4257_v2  ;;  %v4259_v52 = vld [vmem:[%s5893_s9 + $0x30] sm:$0xff] }
0x1010   :  { %4865 = vpow2.f32 %v2912_v3  ;;  %v2901_v45 = vsub.f32 %v2869_v37, %v2893_v47  ;;  %v2890_v56 = vpop.xlane.xlu0 %2889  ;;  %v4260_v3 = vld [vmem:[%s5893_s9 + $0x38] sm:$0xff] }
0x1011   :  { %4867 = vpow2.f32 %v2910_v4  ;;  %v2900_v5 = vsub.f32 %v2868_v36, %v2890_v56  ;;  %v4762_v4 = vpack.c.bf16 %v4260_v3, %v4259_v52  ;;  %v4268_v3 = vld [vmem:[%s5896_s12 + $0x1] ss:$0 sm:$0xff] }
0x1012   :  { %v2916_v6 = vmul.f32 1.442695, %v2901_v45 }
0x1013   :  { %v4860_v53 = vpop.eup %4859  ;;  %v2914_v7 = vmul.f32 1.442695, %v2900_v5  ;;  %v3035_v58 = vpop.permute.xlu1 %3034 }
0x1014   :  { %v4862_v8 = vpop.eup %4861  ;;  %4869 = vpow2.f32 %v2916_v6  ;;  %v2959_v11 = vpop.permute.xlu0 %2958  ;;  %v2921_v12 = vsel %vm389_vm3, %v4860_v53, 0.0  ;;  %4621 = vmatpush3.msra.mxu0 %v3035_v58 }
0x1015   :  { %4871 = vpow2.f32 %v2914_v7  ;;  %2922 = vadd.xlane.f32.xlu1 %v2921_v12  ;;  %v2924_v13 = vsel %vm389_vm3, %v4862_v8, 0.0  ;;  %4616 = vmatpush3.msra.mxu1 %v2959_v11 }
0x1016   :  { %2925 = vadd.xlane.f32.xlu0 %v2924_v13  ;;  %4625 = vmatprep.subr.mxu1 %v5048_v48 }
0x1017   :  { %v4864_v14 = vpop.eup %4863  ;;  %4630 = vmatprep.subr.mxu0 %v5048_v48  ;;  %v3111_v28 = vpop.permute.xlu1 %3110 }
0x1018   :  { %v2927_v15 = vsel %vm389_vm3, %v4864_v14, 0.0  ;;  %v3263_v24 = vpop.permute.xlu0 %3262 }
0x1019   :  { %2928 = vadd.xlane.f32.xlu1 %v2927_v15 }
0x101a   :  { %v4866_v16 = vpop.eup %4865 }
0x101b   :  { %v4868_v17 = vpop.eup %4867  ;;  %v2933_v18 = vsel %vm389_vm3, %v4866_v16, 0.0  ;;  %v3187_v29 = vpop.permute.xlu1 %3186 }
0x101c   :  { %v2930_v19 = vsel %vm389_vm3, %v4868_v17, 0.0 }
0x101d   :  { %2934 = vadd.xlane.f32.xlu1 %v2933_v18  ;;  %2931 = vadd.xlane.f32.xlu0 %v2930_v19 }
0x101e   :  { %v5722_v20 = vpop.eup %4869 }
0x101f   :  { %v5724_v21 = vpop.eup %4871  ;;  %v2939_v22 = vsel %vm389_vm3, %v5722_v20, 0.0 }
0x1020   :  { %v2936_v23 = vsel %vm389_vm3, %v5724_v21, 0.0 }
0x1021   :  { %2940 = vadd.xlane.f32.xlu1 %v2939_v22  ;;  %2937 = vadd.xlane.f32.xlu0 %v2936_v23 }
0x1032   :  { %3490 = vrot.lane.b32.xlu1 %v5633_v62, %s5054_s20  ;;  %v3339_v62 = vpop.permute.xlu1 %3338 }
0x1037   :  { %3414 = vrot.lane.b32.xlu0 %v5619_v51, %s5054_s20 }
0x1049   :  { %v2920_v25 = vpop.xlane.xlu0 %2919 }
0x104a   :  { %4873 = vrcp.f32 %v2920_v25 }
0x1054   :  { %v4874_v26 = vpop.eup %4873 }
0x1055   :  { %v2950_v27 = vmul.f32 %v4874_v26, %v5711_v44 }
0x1057   :  { %4618 = vmatmul.mubr.msk.f32.vlgmr.msra.gmra.mrb[26].mxu1 %vm389_vm3, %v2950_v27 }
0x1058   :  { %4626 = vmatpush3.msra.mxu1 %v3111_v28  ;;  %4627 = vmatprep.mubr.msk.f32.mxu1 %vm5049_vm2, %v5048_v48  ;;  %v4262_v28 = vld [vmem:[%s5894_s10 + $0x1] ss:$0 sm:$0xff] }
0x1059   :  { %4635 = vmatprep.subr.mxu1 %v5048_v48 }
0x10a2   :  { %v2923_v30 = vpop.xlane.xlu1 %2922 }
0x10a3   :  { %4875 = vrcp.f32 %v2923_v30  ;;  %v2926_v51 = vpop.xlane.xlu0 %2925 }
0x10a4   :  { %4877 = vrcp.f32 %v2926_v51 }
0x10a6   :  { %v2929_v31 = vpop.xlane.xlu1 %2928 }
0x10a7   :  { %4879 = vrcp.f32 %v2929_v31 }
0x10aa   :  { %v2935_v32 = vpop.xlane.xlu1 %2934  ;;  %v2932_v34 = vpop.xlane.xlu0 %2931 }
0x10ab   :  { %4881 = vrcp.f32 %v2935_v32 }
0x10ac   :  { %4883 = vrcp.f32 %v2932_v34 }
0x10ad   :  { %v4876_v35 = vpop.eup %4875 }
0x10ae   :  { %v4878_v10 = vpop.eup %4877  ;;  %v2951_v36 = vmul.f32 %v4876_v35, %v4860_v53  ;;  %v2941_v37 = vpop.xlane.xlu1 %2940 }
0x10af   :  { %v2938_v38 = vpop.xlane.xlu0 %2937  ;;  %v2952_v39 = vmul.f32 %v4878_v10, %v4862_v8  ;;  %4885 = vrcp.f32 %v2941_v37 }
0x10b0   :  { %4887 = vrcp.f32 %v2938_v38  ;;  %4623 = vmatmul.mubr.msk.f32.vlgmr.msra.gmra.mrb[34].mxu0 %vm389_vm3, %v2951_v36 }
0x10b1   :  { %v4880_v33 = vpop.eup %4879  ;;  %4628 = vmatmul.mubr.msk.f32.vlgmr.msra.gmra.mrb[28].mxu1 %vm389_vm3, %v2952_v39  ;;  %4631 = vmatpush3.msra.mxu0 %v3187_v29 }
0x10b2   :  { %v2953_v42 = vmul.f32 %v4880_v33, %v4864_v14  ;;  %4636 = vmatpush3.msra.mxu1 %v3263_v24  ;;  %4632 = vmatprep.mubr.msk.f32.mxu0 %vm5049_vm2, %v5048_v48  ;;  %v3491_v49 = vpop.permute.xlu1 %3490 }
0x10b3   :  { %4640 = vmatprep.subr.mxu0 %v5048_v48  ;;  %4637 = vmatprep.mubr.msk.f32.mxu1 %vm5049_vm2, %v5048_v48  ;;  %v3415_v50 = vpop.permute.xlu0 %3414 }
0x10b4   :  { %4633 = vmatmul.mubr.msk.f32.vlgmr.msra.gmra.mrb[36].mxu0 %vm389_vm3, %v2953_v42  ;;  %4645 = vmatprep.subr.mxu1 %v5048_v48 }
0x10b5   :  { %v4882_v43 = vpop.eup %4881  ;;  %4641 = vmatpush3.msra.mxu0 %v3339_v62  ;;  %4642 = vmatprep.mubr.msk.f32.mxu0 %vm5049_vm2, %v5048_v48 }
0x10b6   :  { %v4884_v44 = vpop.eup %4883  ;;  %v2955_v57 = vmul.f32 %v4882_v43, %v4866_v16  ;;  %4650 = vmatprep.subr.mxu0 %v5048_v48 }
0x10b7   :  { %v2954_v60 = vmul.f32 %v4884_v44, %v4868_v17 }
0x10b8   :  { %4643 = vmatmul.mubr.msk.f32.vlgmr.msra.gmra.mrb[38].mxu0 %vm389_vm3, %v2955_v57  ;;  %v4270_v57 = vld [vmem:[%s5897_s13 + $0x28] sm:$0xff] }
0x10b9   :  { %v4886_v61 = vpop.eup %4885  ;;  %4638 = vmatmul.mubr.msk.f32.vlgmr.msra.gmra.mrb[30].mxu1 %vm389_vm3, %v2954_v60  ;;  %4651 = vmatpush3.msra.mxu0 %v3491_v49  ;;  %v4271_v49 = vld [vmem:[%s5897_s13 + $0x30] sm:$0xff] }
0x10ba   :  { %v4888_v63 = vpop.eup %4887  ;;  %v2957_v0 = vmul.f32 %v4886_v61, %v5722_v20  ;;  %4646 = vmatpush3.msra.mxu1 %v3415_v50  ;;  %4647 = vmatprep.mubr.msk.f32.mxu1 %vm5049_vm2, %v5048_v48  ;;  %v4272_v61 = vld [vmem:[%s5897_s13 + $0x38] sm:$0xff] }
0x10bb   :  { %v2956_v46 = vmul.f32 %v4888_v63, %v5724_v21  ;;  %4652 = vmatprep.mubr.msk.f32.mxu0 %vm5049_vm2, %v5048_v48  ;;  %4759 = vmatprep.subr.bf16.mxu1 %v4758_v54  ;;  %v4770_v50 = vpack.c.bf16 %v4272_v61, %v4271_v49 }
0x10bc   :  { %4653 = vmatmul.mubr.msk.f32.vlgmr.msra.gmra.mrb[40].mxu0 %vm389_vm3, %v2957_v0 }
0x10bd   :  { %4648 = vmatmul.mubr.msk.f32.vlgmr.msra.gmra.mrb[32].mxu1 %vm389_vm3, %v2956_v46 }
0x10be   :  { %4761 = vmatpush3.bf16.msra.mxu1 %v4758_v54  ;;  %v4267_v54 = vld [vmem:[%s5895_s11 + $0x1] ss:$0 sm:$0xff] }
0x10bf   :  { %4763 = vmatprep.subr.bf16.mxu1 %v4762_v4 }
0x10c2   :  { %4765 = vmatpush3.bf16.msra.mxu1 %v4762_v4 }
0x112a   :  { %v3030_v1 = vpop.f32.mrb[26].mxu1 }
0x112b   :  { %v4619_v59 = vpop.f32.mrb[27].mxu1 }
0x1183   :  { %v3106_v47 = vpop.f32.mrb[34].mxu0 }
0x1184   :  { %v3182_v45 = vpop.f32.mrb[28].mxu1  ;;  %v4624_v56 = vpop.f32.mrb[35].mxu0  ;;  %3567 = vrot.lane.b32.xlu0 %v3106_v47, %s5924_s0 }
0x1185   :  { %3571 = vrot.lane.b32.xlu1 %v3182_v45, %s5055_s21  ;;  %v4629_v5 = vpop.f32.mrb[29].mxu1 }
0x1187   :  { %v3258_v6 = vpop.f32.mrb[36].mxu0 }
0x1188   :  { %v4634_v53 = vpop.f32.mrb[37].mxu0 }
0x1189   :  { %3575 = vrot.lane.b32.xlu1 %v3258_v6, %s5056_s6  ;;  %v4277_v53 = vld [vmem:[%s5899_s15 + $0x40] sm:$0xff] }
0x118b   :  { %v3410_v7 = vpop.f32.mrb[38].mxu0 }
0x118c   :  { %v3334_v58 = vpop.f32.mrb[30].mxu1  ;;  %v4644_v8 = vpop.f32.mrb[39].mxu0  ;;  %3582 = vrot.lane.b32.xlu0 %v3410_v7, %s5924_s0  ;;  %v4278_v7 = vld [vmem:[%s5899_s15 + $0x48] sm:$0xff] }
0x118d   :  { %v4639_v11 = vpop.f32.mrb[31].mxu1  ;;  %v4279_v8 = vld [vmem:[%s5899_s15 + $0x50] sm:$0xff] }
0x118e   :  { %v4280_v11 = vld [vmem:[%s5899_s15 + $0x58] sm:$0xff] }
0x118f   :  { %v3562_v12 = vpop.f32.mrb[40].mxu0 }
0x1190   :  { %v3486_v13 = vpop.f32.mrb[32].mxu1  ;;  %v4654_v14 = vpop.f32.mrb[41].mxu0  ;;  %3590 = vrot.lane.b32.xlu1 %v3562_v12, %s5056_s6  ;;  %v4778_v12 = vpack.c.bf16 %v4280_v11, %v4279_v8 }
0x1191   :  { %3586 = vrot.lane.b32.xlu0 %v3486_v13, %s5055_s21  ;;  %v4649_v15 = vpop.f32.mrb[33].mxu1  ;;  %v4281_v13 = vld [vmem:[%s5899_s15 + $0x60] sm:$0xff]  ;;  %v4282_v14 = vld [vmem:[%s5899_s15 + $0x68] sm:$0xff] }
0x1192   :  { %v4782_v15 = vpack.c.bf16 %v4282_v14, %v4281_v13 }
0x11f6   :  { %v3568_v16 = vpop.permute.xlu0 %3567 }
0x11f7   :  { %v3572_v17 = vpop.permute.xlu1 %3571  ;;  %v3578_v18 = vsel %vm389_vm3, %v3030_v1, %v3568_v16  ;;  %v4283_v16 = vld [vmem:[%s5899_s15 + $0x70] sm:$0xff] }
0x11f8   :  { %v3579_v20 = vsel %vm145_vm0, %v3578_v18, %v3572_v17  ;;  %v4284_v17 = vld [vmem:[%s5899_s15 + $0x78] sm:$0xff] }
0x11f9   :  { %v4786_v18 = vpack.c.bf16 %v4284_v17, %v4283_v16  ;;  %v3996_v16 = vld [vmem:[%s5903_s19] sm:$0x1] }
0x11fb   :  { %v3576_v19 = vpop.permute.xlu1 %3575 }
0x11fc   :  { %v3580_v21 = vsel %vm1730_vm4, %v3579_v20, %v3576_v19  ;;  %v4274_v19 = vld [vmem:[%s5898_s14 + $0x1] ss:$0 sm:$0xff] }
0x11fd   :  { %4663 = vmatprep.mubr.msk.f32.mxu1 %vm231_vm1, %v3580_v21 }
0x11fe   :  { %v3583_v22 = vpop.permute.xlu0 %3582 }
0x11ff   :  { %v3593_v24 = vsel %vm389_vm3, %v3334_v58, %v3583_v22  ;;  %v4774_v58 = vpack.c.bf16 %v4278_v7, %v4277_v53 }
0x1201   :  { %4775 = vmatprep.subr.bf16.mxu1 %v4774_v58 }
0x1202   :  { %v3591_v23 = vpop.permute.xlu1 %3590 }
0x1203   :  { %v3587_v25 = vpop.permute.xlu0 %3586 }
0x1204   :  { %v3594_v26 = vsel %vm145_vm0, %v3593_v24, %v3587_v25 }
0x1205   :  { %v3595_v27 = vsel %vm1730_vm4, %v3594_v26, %v3591_v23 }
0x1206   :  { %4664 = vmatmul.mubr.msk.f32.vlgmr.msra.gmra.mrb[34].mxu1 %vm231_vm1, %v3595_v27 }
0x1207   :  { %4777 = vmatpush3.bf16.msra.mxu1 %v4774_v58  ;;  %v4291_v58 = vld [vmem:[%s5901_s17 + $0x1] ss:$0 sm:$0xff]  ;;  %s5058_s17 = smov [#allocation12]  }
0x1208   :  { %4779 = vmatprep.subr.bf16.mxu1 %v4778_v12 }
0x120b   :  { %4781 = vmatpush3.bf16.msra.mxu1 %v4778_v12  ;;  %v4292_v12 = vld [vmem:[%s5902_s18 + $0x1] ss:$0 sm:$0xff]  ;;  %s4169_s18 = sshll.u32 %s5058_s17, 4  ;;  %s4170_s18 = int_to_ptr.vmem [resolvable:$true] %s4169_s18 }
0x120c   :  { %4783 = vmatprep.subr.bf16.mxu1 %v4782_v15  ;;  %s5011_s19 = scalar_lea.vmem %s4170_s18, 32  ;;  %p5016_p13 = scmp.lt.s32.totalorder %s4170_s18, %s4170_s18 }
0x120d   :  { %p5012_p12 = scmp.ne.s32.totalorder %s4170_s18, %s5011_s19  ;;  %p5017_p0 = scmp.lt.s32.totalorder %s5011_s19, %s5011_s19 }
0x120f   :  { %4785 = vmatpush3.bf16.msra.mxu1 %v4782_v15  ;;  %p5018_p1 = por %p5017_p0, %p5016_p13 }
0x1210   :  { %4787 = vmatprep.subr.bf16.mxu1 %v4786_v18 }
0x1211   :  { %p5019_p2 = pnand %p5018_p1, %p5012_p12 }
0x1213   :  { %4789 = vmatpush3.bf16.msra.mxu1 %v4786_v18 }
0x12d9   :  { %v4665_v29 = vpop.f32.mrb[34].mxu1 }
0x12da   :  { %v3687_v62 = vadd.f32 %v4665_v29, %v4262_v28  ;;  %v3681_v30 = vpop.f32.mrb[35].mxu1 }
0x12db   :  { %v3682_v51 = vadd.f32 %v4262_v28, %v3681_v30 }
0x12dc   :  { %v3691_v31 = vadd.f32 %v3687_v62, %v5580_v41 }
0x12dd   :  { %v3690_v32 = vadd.f32 %v3682_v51, %v5578_v40  ;;  %v4269_v40 = vld [vmem:[%s5897_s13 + $0x20] sm:$0xff] }
0x12de   :  { %v3699_v34 = vsel %vm231_vm1, %v3691_v31, 0.0  ;;  %v4766_v60 = vpack.c.bf16 %v4270_v57, %v4269_v40 }
0x12df   :  { %3700 = vadd.xlane.f32.xlu1 %v3699_v34  ;;  %v3696_v35 = vsel %vm231_vm1, %v3690_v32, 0.0 }
0x12e0   :  { %3697 = vadd.xlane.f32.xlu0 %v3696_v35  ;;  %4767 = vmatprep.subr.bf16.mxu0 %v4766_v60 }
0x12e1   :  { %4769 = vmatpush3.bf16.msra.mxu0 %v4766_v60 }
0x12e2   :  { %4771 = vmatprep.subr.bf16.mxu0 %v4770_v50 }
0x12e5   :  { %4773 = vmatpush3.bf16.msra.mxu0 %v4770_v50 }
0x12e6   :  { %4696 = vmatprep.subr.mxu0 %v5048_v48 }
0x136c   :  { %v3701_v10 = vpop.xlane.xlu1 %3700 }
0x136d   :  { %v3703_v36 = vmul.f32 0.03125, %v3701_v10  ;;  %v3698_v37 = vpop.xlane.xlu0 %3697 }
0x136e   :  { %v3702_v38 = vmul.f32 0.03125, %v3698_v37 }
0x136f   :  { %v3705_v39 = vsub.f32 %v3691_v31, %v3703_v36 }
0x1370   :  { %v3704_v33 = vsub.f32 %v3690_v32, %v3702_v38 }
0x1371   :  { %v3707_v44 = vmul.f32 %v3705_v39, %v3705_v39 }
0x1372   :  { %v3706_v42 = vmul.f32 %v3704_v33, %v3704_v33 }
0x1373   :  { %v3711_v41 = vsel %vm231_vm1, %v3707_v44, 0.0 }
0x1374   :  { %v3708_v43 = vsel %vm231_vm1, %v3706_v42, 0.0 }
0x1375   :  { %3709 = vadd.xlane.f32.xlu0 %v3708_v43 }
0x1379   :  { %3712 = vadd.xlane.f32.xlu0 %v3711_v41 }
0x1402   :  { %v3710_v63 = vpop.xlane.xlu0 %3709 }
0x1403   :  { %v3714_v0 = vmul.f32 0.03125, %v3710_v63 }
0x1405   :  { %v3716_v46 = vadd.f32 1e-12, %v3714_v0 }
0x1406   :  { %v3713_v1 = vpop.xlane.xlu0 %3712 }
0x1407   :  { %4889 = vrsqrt.f32 %v3716_v46  ;;  %v3715_v59 = vmul.f32 0.03125, %v3713_v1 }
0x1409   :  { %v3717_v2 = vadd.f32 1e-12, %v3715_v59 }
0x140b   :  { %4891 = vrsqrt.f32 %v3717_v2 }
0x1411   :  { %v4890_v55 = vpop.eup %4889 }
0x1412   :  { %v3720_v52 = vmul.f32 %v4890_v55, %v3704_v33  ;;  %v4286_v33 = vld [vmem:[%s5900_s16 + $0x1] ss:$0 sm:$0xff] }
0x1414   :  { %v3728_v4 = vmul.f32 %v4267_v54, %v3720_v52  ;;  %v3997_v52 = vld [vmem:[#allocation2] sm:$0x1] }
0x1415   :  { %v4892_v47 = vpop.eup %4891 }
0x1416   :  { %v3721_v45 = vmul.f32 %v4892_v47, %v3705_v39  ;;  %v3736_v56 = vadd.f32 %v4268_v3, %v3728_v4 }
0x1418   :  { %v3729_v5 = vmul.f32 %v4267_v54, %v3721_v45  ;;  %4674 = vmatprep.mubr.msk.f32.mxu0 %vm231_vm1, %v3736_v56 }
0x141a   :  { %v3737_v6 = vadd.f32 %v4268_v3, %v3729_v5  ;;  %v5057_v3 = vmov 0  }
0x141b   :  { %4808 = vset.pattern.permute.xlu0 %v5057_v3 }
0x141c   :  { %4675 = vmatmul.mubr.msk.f32.vlgmr.msra.gmra.mrb[42].mxu0 %vm231_vm1, %v3737_v6 }
0x141d   :  { %4698 = vmatprep.mubr.msk.f32.mxu0 %vm5049_vm2, %v5048_v48 }
0x14ef   :  { %v4676_v20 = vpop.f32.mrb[42].mxu0 }
0x14f0   :  { %v3829_v21 = vadd.f32 %v4676_v20, %v4274_v19  ;;  %v3823_v22 = vpop.f32.mrb[43].mxu0 }
0x14f1   :  { %v3824_v23 = vadd.f32 %v4274_v19, %v3823_v22 }
0x14f2   :  { %v3835_v24 = vmul.f32 0.044715, %v3829_v21  ;;  %v3833_v37 = vmul.f32 0.5, %v3829_v21 }
0x14f3   :  { %v3834_v25 = vmul.f32 0.044715, %v3824_v23  ;;  %v3832_v10 = vmul.f32 0.5, %v3824_v23 }
0x14f4   :  { %v3837_v26 = vmul.f32 %v3835_v24, %v3829_v21 }
0x14f5   :  { %v3836_v27 = vmul.f32 %v3834_v25, %v3824_v23 }
0x14f6   :  { %v3839_v28 = vmul.f32 %v3837_v26, %v3829_v21 }
0x14f7   :  { %v3838_v29 = vmul.f32 %v3836_v27, %v3824_v23 }
0x14f8   :  { %v3841_v62 = vadd.f32 %v3839_v28, %v3829_v21 }
0x14f9   :  { %v3840_v30 = vadd.f32 %v3838_v29, %v3824_v23 }
0x14fa   :  { %v3843_v51 = vmul.f32 0.7978846, %v3841_v62 }
0x14fb   :  { %v3842_v31 = vmul.f32 0.7978846, %v3840_v30 }
0x14fc   :  { %4893 = vtanh.f32 %v3843_v51 }
0x14fd   :  { %4895 = vtanh.f32 %v3842_v31 }
0x1506   :  { %v4894_v32 = vpop.eup %4893 }
0x1507   :  { %v4896_v34 = vpop.eup %4895  ;;  %v3847_v35 = vadd.f32 1.0, %v4894_v32 }
0x1508   :  { %v3846_v36 = vadd.f32 1.0, %v4896_v34 }
0x1509   :  { %v3849_v39 = vmul.f32 %v3847_v35, %v3833_v37 }
0x150a   :  { %v3848_v38 = vmul.f32 %v3846_v36, %v3832_v10 }
0x150c   :  { %4693 = vmatprep.mubr.msk.f32.mxu1 %vm2010_vm5, %v3848_v38 }
0x150d   :  { %4694 = vmatmul.mubr.msk.f32.vlgmr.msra.gmra.mrb[36].mxu1 %vm2010_vm5, %v3849_v39 }
0x15e0   :  { %v4695_v42 = vpop.f32.mrb[36].mxu1 }
0x15e1   :  { %v3945_v43 = vadd.f32 %v4695_v42, %v4286_v33  ;;  %v3939_v44 = vpop.f32.mrb[37].mxu1 }
0x15e2   :  { %v3940_v41 = vadd.f32 %v4286_v33, %v3939_v44 }
0x15e3   :  { %v3949_v40 = vadd.f32 %v3945_v43, %v3737_v6 }
0x15e4   :  { %v3948_v57 = vadd.f32 %v3940_v41, %v3736_v56 }
0x15e5   :  { %v3957_v60 = vsel %vm231_vm1, %v3949_v40, 0.0 }
0x15e6   :  { %3958 = vadd.xlane.f32.xlu1 %v3957_v60  ;;  %v3954_v49 = vsel %vm231_vm1, %v3948_v57, 0.0 }
0x15e7   :  { %3955 = vadd.xlane.f32.xlu0 %v3954_v49 }
0x1673   :  { %v3959_v61 = vpop.xlane.xlu1 %3958 }
0x1674   :  { %v3961_v50 = vmul.f32 0.03125, %v3959_v61  ;;  %v3956_v63 = vpop.xlane.xlu0 %3955 }
0x1675   :  { %v3960_v0 = vmul.f32 0.03125, %v3956_v63 }
0x1676   :  { %v3963_v46 = vsub.f32 %v3949_v40, %v3961_v50 }
0x1677   :  { %v3962_v1 = vsub.f32 %v3948_v57, %v3960_v0 }
0x1678   :  { %v3965_v59 = vmul.f32 %v3963_v46, %v3963_v46 }
0x1679   :  { %v3964_v2 = vmul.f32 %v3962_v1, %v3962_v1 }
0x167a   :  { %v3969_v55 = vsel %vm231_vm1, %v3965_v59, 0.0 }
0x167b   :  { %3970 = vadd.xlane.f32.xlu1 %v3969_v55  ;;  %v3966_v54 = vsel %vm231_vm1, %v3964_v2, 0.0 }
0x167c   :  { %3967 = vadd.xlane.f32.xlu0 %v3966_v54 }
0x1692   :  { %4000 = vperm.xlu0 %4808, %v3997_v52  }
0x1708   :  { %v3971_v4 = vpop.xlane.xlu1 %3970 }
0x1709   :  { %v3973_v47 = vmul.f32 0.03125, %v3971_v4  ;;  %v3968_v45 = vpop.xlane.xlu0 %3967 }
0x170a   :  { %v3972_v56 = vmul.f32 0.03125, %v3968_v45 }
0x170b   :  { %v3975_v5 = vadd.f32 1e-12, %v3973_v47 }
0x170c   :  { %v3974_v6 = vadd.f32 1e-12, %v3972_v56 }
0x170d   :  { %4897 = vrsqrt.f32 %v3975_v5 }
0x170e   :  { %4899 = vrsqrt.f32 %v3974_v6 }
0x1711   :  { %v4001_v18 = vpop.permute.xlu0 %4000 }
0x1712   :  { %v4006_v21 = vrot.slane %v4001_v18, %v5379_v9 }
0x1717   :  { %v4898_v53 = vpop.eup %4897 }
0x1718   :  { %v4900_v7 = vpop.eup %4899  ;;  %v3979_v8 = vmul.f32 %v4898_v53, %v3963_v46 }
0x1719   :  { %v3978_v11 = vmul.f32 %v4900_v7, %v3962_v1 }
0x171a   :  { %v3987_v14 = vmul.f32 %v4291_v58, %v3979_v8 }
0x171b   :  { %v3986_v13 = vmul.f32 %v4291_v58, %v3978_v11 }
0x171c   :  { %v3995_v17 = vadd.f32 %v4292_v12, %v3987_v14 }
0x171d   :  { %v3994_v15 = vadd.f32 %v4292_v12, %v3986_v13 }
0x171f   :  { %4697 = vmatpush3.xpose.msk.msra.mxu0 %vm231_vm1, %v3994_v15 }
0x1720   :  { %4701 = vmatprep.subr.mxu0 %v5048_v48 }
0x1722   :  { %4699 = vmatmul.mubr.msk.f32.vlgmr.msra.gmra.mrb[44].mxu0 %vm231_vm1, %v3996_v16 }
0x1723   :  { %4702 = vmatpush3.xpose.msk.msra.mxu0 %vm231_vm1, %v3995_v17  ;;  %4703 = vmatprep.mubr.msk.f32.mxu0 %vm5049_vm2, %v5048_v48 }
0x1726   :  { %4704 = vmatmul.mubr.msk.f32.vlgmr.msra.gmra.mrb[46].mxu0 %vm231_vm1, %v3996_v16 }
0x17f5   :  { %v4079_v19 = vpop.f32.mrb[44].mxu0 }
0x17f6   :  { %v4700_v20 = vpop.f32.mrb[45].mxu0  ;;  %v4080_v25 = vadd.f32 %v4079_v19, %v4006_v21 }
0x17f9   :  { %v4152_v22 = vpop.f32.mrb[46].mxu0 }
0x17fa   :  { %v4153_v23 = vadd.f32 %v4152_v22, %v4006_v21  ;;  %v4705_v24 = vpop.f32.mrb[47].mxu0 }
0x17fc   :  { %v4157_v26 = vrot.slane %v4153_v23, 7 }
0x17fe   :  { %v4160_v27 = vsel %vm4159_vm6, %v4080_v25, %v4157_v26 }
0x17ff   :  { %4162 = vst.msk [vmem:[#allocation12] sm:$0x3] %vm4161_vm7, %v4160_v27 }
0x1800   :  { %5022 = shalt.err (!%p5019_p2)
}
0x1801   :  { %s5929_s29 = sld [smem:[#allocation23_spill]] }
0x1807   :  { %s5023_s11 = scalar_lea.hbm %s5929_s29, 32 }
0x1808   :  { %p5024_p3 = scmp.ne.s32.totalorder %s5929_s29, %s5023_s11  ;;  %p5027_p4 = scmp.lt.u32.totalorder %s5023_s11, %s5929_s29 }
0x180a   :  { %p5029_p5 = pnand %p5027_p4, %p5024_p3 }
0x180c   :  { %5032 = shalt.err (!%p5029_p5)
}
0x180d   :  { %4172 = dma.vmem_to_hbm [thread:$0]  %s4170_s18, 32, %s5929_s29, [#allocation5]  }
0x180e   :  { %5039 = dma.done.wait [#allocation5], 32  }
0x180f   :  { %5040 = vsyncadd [#allocation5], 4294967264 }
0x1810   :  { %4176 = vsyncpa [#allocation4], 1 }
0x1811   :  { %4177 = vsyncpa [#allocation7], 1 }
0x1812   :  { %4178 = vsyncpa [#allocation10], 1 }
0x1813   :  { %4179 = vsyncpa [#allocation5], 1 }

</bundles_post_ra>
